<compile_context>
chip_gen: v7x
topology: tpu7x:2x2x1
jax: 0.10.0
libtpu: 0.0.40
codegen_flags: <defaults>
</compile_context>

<pallas_src>
import jax
import jax.numpy as jnp
from jax.experimental import pallas as pl
from jax.experimental.pallas import tpu as pltpu

_MIB = 1024 * 1024


def _round_down(x, m):
    return (x // m) * m


# ----------------------------- Pallas kernel ------------------------------ #
def movienet_kernel(xp_ref, xq_ref,
                    wpT_ref, bp_ref,            # synthetic poster_net head
                    wqT_ref, bq_ref,            # synthetic plot_net head
                    apT_ref, aqT_ref, beff_ref,  # folded fc1->fc2->fc3
                    out_ref, poster_acc):
    f32 = jnp.float32
    k = pl.program_id(1)

    @pl.when(k == 0)
    def _():
        poster_acc[...] = jnp.zeros_like(poster_acc)

    # Poster head partial product for this K slice. The activation streams
    # from HBM as f32 and is cast to bf16 here (VPU has large slack; no
    # wrapper-side HBM round trip).
    xp = xp_ref[...].astype(jnp.bfloat16)
    poster_acc[...] += jnp.dot(xp, wpT_ref[...], preferred_element_type=f32)

    @pl.when(k == pl.num_programs(1) - 1)
    def _():
        poster = jnp.maximum(poster_acc[...] + bp_ref[...], 0.0)       # [tb,50]

        xq = xq_ref[...].astype(jnp.bfloat16)
        plot = jnp.maximum(
            jnp.dot(xq, wqT_ref[...], preferred_element_type=f32) + bq_ref[...],
            0.0)                                                       # [tb,50]

        # Folded fc1 -> fc2 -> fc3 over the (virtual) concat.
        logits = (jnp.dot(poster, apT_ref[...], preferred_element_type=f32)
                  + jnp.dot(plot, aqT_ref[...], preferred_element_type=f32)
                  + beff_ref[...])                                     # [tb,2]

        # LogSoftmax(dim=1)
        m = jnp.max(logits, axis=1, keepdims=True)
        z = logits - m
        lse = jnp.log(jnp.sum(jnp.exp(z), axis=1, keepdims=True))
        out_ref[...] = z - lse


# ----------------------------- tiling helpers ----------------------------- #
def _choose_k_tile(dp, k_tile_max=2048):
    """K (poster-feature) tile: must evenly divide Dp and be a multiple of
    128, or be the full Dp."""
    if dp <= k_tile_max:
        return dp
    start = max(128, _round_down(k_tile_max, 128))
    for tk in range(start, 0, -128):
        if dp % tk == 0:
            return tk
    # TODO(synk): mask the ragged K tail if Dp has no multiple-of-128 divisor.
    return dp


def _vmem_limit_cap_bytes():
    """<= 3/4 of physical per-core VMEM (<= 48 MiB on v7x's 64 MiB cores,
    <= 96 MiB on 128 MiB v5e/v6e); conservative if the query is unavailable."""
    try:
        phys = pltpu.get_tpu_info().vmem_capacity_bytes
    except Exception:
        phys = 64 * _MIB            # assume v7x per-TensorCore (worst case)
    return min(96 * _MIB, (phys * 3) // 4)


# ------------------------------ JAX wrapper ------------------------------- #
def movienet_forward(x_poster, x_plot, params):
    """x_poster: [B, C, H, W] (NCHW, like PyTorch), x_plot: [B, Dq]."""
    B = x_poster.shape[0]
    (wp, bp, wq, bq, w1, b1, w2, b2, w3, b3) = params

    # Flatten NCHW -> [B, Dp]; stays f32 in HBM (bf16 cast happens in-kernel),
    # so there is no wrapper-side pad / cast materialization pass.
    xp = x_poster.reshape(B, -1).astype(jnp.float32)
    xq = x_plot.astype(jnp.float32)
    Dp = xp.shape[1]
    Dq = xq.shape[1]

    # Head weights: pre-transpose to [in, out]; cast the big ones to bf16
    # once (tiny vs. the activation stream).
    wpT = wp.T.astype(jnp.bfloat16)              # [Dp, 50]
    wqT = wq.T.astype(jnp.bfloat16)              # [Dq, 50]

    # Fold the activation-free fc1 -> fc2 -> fc3 chain (f32). Only valid
    # because there is no nonlinearity/dropout between fc1/fc2/fc3.
    w123 = (w1.astype(jnp.float32).T @ w2.astype(jnp.float32).T
            @ w3.astype(jnp.float32).T)          # [100, 2]
    apT, aqT = w123[:50], w123[50:]              # [50, 2] each
    beff = (b1 @ w2.T + b2) @ w3.T + b3          # [2]

    # ---- tiling ----
    tk = _choose_k_tile(Dp)
    nk = pl.cdiv(Dp, tk)

    limit_cap = _vmem_limit_cap_bytes()
    # Budget for the double-buffered f32 activation tiles; leave the rest of
    # the cap for weights / accumulator / compiler-internal scratch.
    input_budget = max(8 * _MIB, limit_cap - 16 * _MIB)
    tb_cap = 4096 if limit_cap > 48 * _MIB else 2048
    row_bytes = 2 * (tk + Dq) * 4
    tb = min(tb_cap, max(8, _round_down(input_budget // row_bytes, 8)))
    if B <= tb:
        tb = B                 # single full-dim batch block, no padding
    nb = pl.cdiv(B, tb)        # ragged tail: OOB reads are per-row garbage,
                               # OOB writes masked; rows are independent.

    need = (2 * tb * tk * 4 + 2 * tb * Dq * 4 + 2 * tb * 2 * 4   # streams
            + 2 * (tk * 50 * 2 + Dq * 50 * 2)                    # head weights
            + tb * 50 * 4 + 64 * 1024)                           # acc + small
    vmem_limit = int(min(limit_cap, max(32 * _MIB, need + 8 * _MIB)))

    row_b = lambda i, k: (i, 0)
    const = lambda i, k: (0, 0)

    def build(single_buffer_consts):
        ckw = dict(pipeline_mode=pl.Buffered(1)) if single_buffer_consts else {}
        wp_kw = ckw if nk == 1 else {}   # wpT streams over K when nk > 1
        in_specs = [
            pl.BlockSpec((tb, tk), lambda i, k: (i, k)),           # xp  (f32)
            pl.BlockSpec((tb, Dq), row_b),                         # xq  (f32)
            pl.BlockSpec((tk, 50), lambda i, k: (k, 0), **wp_kw),  # wpT (bf16)
            pl.BlockSpec((1, 50), const, **ckw),                   # bp
            pl.BlockSpec((Dq, 50), const, **ckw),                  # wqT (bf16)
            pl.BlockSpec((1, 50), const, **ckw),                   # bq
            pl.BlockSpec((50, 2), const, **ckw),                   # A_p
            pl.BlockSpec((50, 2), const, **ckw),                   # A_q
            pl.BlockSpec((1, 2), const, **ckw),                    # b_eff
        ]
        return pl.pallas_call(
            movienet_kernel,
            out_shape=jax.ShapeDtypeStruct((B, 2), jnp.float32),
            grid=(nb, nk),
            in_specs=in_specs,
            out_specs=pl.BlockSpec((tb, 2), row_b),
            scratch_shapes=[pltpu.VMEM((tb, 50), jnp.float32)],
            compiler_params=pltpu.CompilerParams(
                # TODO(synk): if an xprof trace shows one v7x TC idle, switch
                # the batch axis to pltpu.CORE_PARALLEL / explicit core_map.
                dimension_semantics=("parallel", "arbitrary"),
                vmem_limit_bytes=vmem_limit,
            ),
        )

    args = (xp, xq,
            wpT, bp[None, :].astype(jnp.float32),
            wqT, bq[None, :].astype(jnp.float32),
            apT, aqT, beff[None, :].astype(jnp.float32))
    try:
        return build(True)(*args)
    except Exception:
        # Fallback if this JAX version rejects single-buffered pipeline_mode
        # on a top-level pallas_call grid.
        return build(False)(*args)


# --------------------------- params & references --------------------------- #
def make_params(key, poster_in, plot_in):
    """Deterministic synthetic parameters (PyTorch Linear convention: (out, in))."""
    ks = jax.random.split(key, 10)

    def lin(kw, kb, out_f, in_f):
        scale = 1.0 / jnp.sqrt(jnp.float32(in_f))
        w = jax.random.uniform(kw, (out_f, in_f), jnp.float32, -scale, scale)
        b = jax.random.uniform(kb, (out_f,), jnp.float32, -scale, scale)
        return w, b

    wp, bp = lin(ks[0], ks[1], 50, poster_in)   # poster_net head
    wq, bq = lin(ks[2], ks[3], 50, plot_in)     # plot_net head
    w1, b1 = lin(ks[4], ks[5], 50, 100)         # fc1
    w2, b2 = lin(ks[6], ks[7], 10, 50)          # fc2
    w3, b3 = lin(ks[8], ks[9], 2, 10)           # fc3
    return (wp, bp, wq, bq, w1, b1, w2, b2, w3, b3)


def reference_forward_f32(x_poster, x_plot, params):
    """Pure-f32 JAX reference mirroring the PyTorch forward (eval mode)."""
    (wp, bp, wq, bq, w1, b1, w2, b2, w3, b3) = params
    B = x_poster.shape[0]
    xp = x_poster.reshape(B, -1)
    poster = jnp.maximum(xp @ wp.T + bp, 0.0)
    plot = jnp.maximum(x_plot @ wq.T + bq, 0.0)
    x = jnp.concatenate([poster, plot], axis=1)
    x = x @ w1.T + b1
    x = x @ w2.T + b2
    x = x @ w3.T + b3
    return jax.nn.log_softmax(x, axis=1)


def reference_forward_mixed(x_poster, x_plot, params):
    """Reference mirroring the kernel's dtypes (bf16 head matmuls, f32 acc),
    but keeping the original fc1->fc2->fc3 ordering (validates the folding)."""
    (wp, bp, wq, bq, w1, b1, w2, b2, w3, b3) = params
    B = x_poster.shape[0]
    f32 = jnp.float32
    xp = x_poster.reshape(B, -1).astype(jnp.bfloat16)
    xq = x_plot.astype(jnp.bfloat16)
    poster = jnp.maximum(
        jnp.dot(xp, wp.T.astype(jnp.bfloat16), preferred_element_type=f32) + bp, 0.0)
    plot = jnp.maximum(
        jnp.dot(xq, wq.T.astype(jnp.bfloat16), preferred_element_type=f32) + bq, 0.0)
    x = jnp.concatenate([poster, plot], axis=1)
    x = x @ w1.T + b1
    x = x @ w2.T + b2
    x = x @ w3.T + b3
    return jax.nn.log_softmax(x, axis=1)


if __name__ == "__main__":
    B, C, H, W = 2, 4, 16, 16
    D_PLOT = 64

    key = jax.random.PRNGKey(0)
    k_poster, k_plot, k_params = jax.random.split(key, 3)

    x_poster = jax.random.normal(k_poster, (B, C, H, W), jnp.float32)
    x_plot = jax.random.normal(k_plot, (B, D_PLOT), jnp.float32)
    params = make_params(k_params, C * H * W, D_PLOT)

    out = movienet_forward(x_poster, x_plot, params)
    out = jax.block_until_ready(out)
    assert out.shape == (B, 2)

    # Tight check vs a reference that mirrors the kernel's bf16/f32 numerics
    # (also validates the fc-chain folding, which only reorders f32 math).
    ref_mixed = reference_forward_mixed(x_poster, x_plot, params)
    assert jnp.allclose(out, ref_mixed, rtol=2e-4, atol=2e-4), (
        "mismatch vs bf16-mirroring reference")

    # Loose sanity check vs the pure-f32 PyTorch-equivalent forward
    # (bf16 quantization of inputs/head weights accounts for the drift).
    ref_f32 = reference_forward_f32(x_poster, x_plot, params)
    assert jnp.max(jnp.abs(out - ref_f32)) < 5e-2, "drift vs f32 reference too large"

    print("KERNEL_OK")
</pallas_src>

<mosaic_0001>
module attributes {stable_mosaic.version = 11 : i64} {
  func.func @movienet_kernel(%arg0: i32, %arg1: i32, %arg2: memref<2x1024xf32, #tpu.memory_space<vmem>>, %arg3: memref<2x64xf32, #tpu.memory_space<vmem>>, %arg4: memref<1024x50xbf16, #tpu.memory_space<vmem>>, %arg5: memref<1x50xf32, #tpu.memory_space<vmem>>, %arg6: memref<64x50xbf16, #tpu.memory_space<vmem>>, %arg7: memref<1x50xf32, #tpu.memory_space<vmem>>, %arg8: memref<50x2xf32, #tpu.memory_space<vmem>>, %arg9: memref<50x2xf32, #tpu.memory_space<vmem>>, %arg10: memref<1x2xf32, #tpu.memory_space<vmem>>, %arg11: memref<2x2xf32, #tpu.memory_space<vmem>>, %arg12: memref<2x50xf32, #tpu.memory_space<vmem>>) attributes {dimension_semantics = [#tpu.dimension_semantics<parallel>, #tpu.dimension_semantics<arbitrary>], iteration_bounds = array<i64: 1, 1>, scalar_prefetch = 0 : i64, scratch_operands = 1 : i64, tpu.core_type = #tpu.core_type<tc>, window_params = [{transform_indices = @transform_0, window_bounds = array<i64: 2, 1024>}, {transform_indices = @transform_1, window_bounds = array<i64: 2, 64>}, {pipeline_mode = #tpu.pipeline_mode<synchronous>, transform_indices = @transform_2, window_bounds = array<i64: 1024, 50>}, {pipeline_mode = #tpu.pipeline_mode<synchronous>, transform_indices = @transform_3, window_bounds = array<i64: 1, 50>}, {pipeline_mode = #tpu.pipeline_mode<synchronous>, transform_indices = @transform_4, window_bounds = array<i64: 64, 50>}, {pipeline_mode = #tpu.pipeline_mode<synchronous>, transform_indices = @transform_5, window_bounds = array<i64: 1, 50>}, {pipeline_mode = #tpu.pipeline_mode<synchronous>, transform_indices = @transform_6, window_bounds = array<i64: 50, 2>}, {pipeline_mode = #tpu.pipeline_mode<synchronous>, transform_indices = @transform_7, window_bounds = array<i64: 50, 2>}, {pipeline_mode = #tpu.pipeline_mode<synchronous>, transform_indices = @transform_8, window_bounds = array<i64: 1, 2>}, {transform_indices = @transform_9, window_bounds = array<i64: 2, 2>}]} {
    %c0_i32 = arith.constant 0 : i32
    %0 = arith.cmpi eq, %arg1, %c0_i32 : i32
    %1 = arith.extui %0 : i1 to i32
    %c0_i32_0 = arith.constant 0 : i32
    %2 = arith.cmpi ne, %1, %c0_i32_0 : i32
    scf.if %2 {
      %cst_10 = arith.constant 0.000000e+00 : f32
      %13 = vector.broadcast %cst_10 : f32 to vector<2x50xf32>
      %c0_11 = arith.constant 0 : index
      %c0_12 = arith.constant 0 : index
      %14 = vector.load %arg12[%c0_11, %c0_12] : memref<2x50xf32, #tpu.memory_space<vmem>>, vector<2x50xf32>
      tpu.vector_store %arg12[%c0_11, %c0_12], %13 {strides = array<i32>} : memref<2x50xf32, #tpu.memory_space<vmem>>, vector<2x50xf32>,
    } else {
    }
    %c0 = arith.constant 0 : index
    %c0_1 = arith.constant 0 : index
    %3 = vector.load %arg2[%c0, %c0_1] : memref<2x1024xf32, #tpu.memory_space<vmem>>, vector<2x1024xf32>
    %4 = arith.truncf %3 : vector<2x1024xf32> to vector<2x1024xbf16>
    %c0_2 = arith.constant 0 : index
    %c0_3 = arith.constant 0 : index
    %5 = vector.load %arg12[%c0_2, %c0_3] : memref<2x50xf32, #tpu.memory_space<vmem>>, vector<2x50xf32>
    %c0_4 = arith.constant 0 : index
    %c0_5 = arith.constant 0 : index
    %6 = vector.load %arg4[%c0_4, %c0_5] : memref<1024x50xbf16, #tpu.memory_space<vmem>>, vector<1024x50xbf16>
    %cst = arith.constant dense<0.000000e+00> : vector<2x50xf32>
    %7 = tpu.matmul %4, %6, %cst {dimension_numbers = #tpu.dot_dimension_numbers<[1], [0], [0], [1], [0, 0, 1, 1], [], []>} : vector<2x1024xbf16>, vector<1024x50xbf16>, vector<2x50xf32> -> vector<2x50xf32>
    %8 = arith.addf %5, %7 : vector<2x50xf32>
    %c0_6 = arith.constant 0 : index
    %c0_7 = arith.constant 0 : index
    %9 = vector.load %arg12[%c0_6, %c0_7] : memref<2x50xf32, #tpu.memory_space<vmem>>, vector<2x50xf32>
    tpu.vector_store %arg12[%c0_6, %c0_7], %8 {strides = array<i32>} : memref<2x50xf32, #tpu.memory_space<vmem>>, vector<2x50xf32>,
    %c0_i32_8 = arith.constant 0 : i32
    %10 = arith.cmpi eq, %arg1, %c0_i32_8 : i32
    %11 = arith.extui %10 : i1 to i32
    %c0_i32_9 = arith.constant 0 : i32
    %12 = arith.cmpi ne, %11, %c0_i32_9 : i32
    scf.if %12 {
      %c0_10 = arith.constant 0 : index
      %c0_11 = arith.constant 0 : index
      %13 = vector.load %arg12[%c0_10, %c0_11] : memref<2x50xf32, #tpu.memory_space<vmem>>, vector<2x50xf32>
      %c0_12 = arith.constant 0 : index
      %c0_13 = arith.constant 0 : index
      %14 = vector.load %arg5[%c0_12, %c0_13] : memref<1x50xf32, #tpu.memory_space<vmem>>, vector<1x50xf32>
      %15 = vector.broadcast %14 : vector<1x50xf32> to vector<2x50xf32>
      %16 = arith.addf %13, %15 : vector<2x50xf32>
      %cst_14 = arith.constant 0.000000e+00 : f32
      %17 = vector.broadcast %cst_14 : f32 to vector<2x50xf32>
      %18 = arith.maximumf %16, %17 : vector<2x50xf32>
      %c0_15 = arith.constant 0 : index
      %c0_16 = arith.constant 0 : index
      %19 = vector.load %arg3[%c0_15, %c0_16] : memref<2x64xf32, #tpu.memory_space<vmem>>, vector<2x64xf32>
      %20 = arith.truncf %19 : vector<2x64xf32> to vector<2x64xbf16>
      %c0_17 = arith.constant 0 : index
      %c0_18 = arith.constant 0 : index
      %21 = vector.load %arg6[%c0_17, %c0_18] : memref<64x50xbf16, #tpu.memory_space<vmem>>, vector<64x50xbf16>
      %cst_19 = arith.constant dense<0.000000e+00> : vector<2x50xf32>
      %22 = tpu.matmul %20, %21, %cst_19 {dimension_numbers = #tpu.dot_dimension_numbers<[1], [0], [0], [1], [0, 0, 1, 1], [], []>} : vector<2x64xbf16>, vector<64x50xbf16>, vector<2x50xf32> -> vector<2x50xf32>
      %c0_20 = arith.constant 0 : index
      %c0_21 = arith.constant 0 : index
      %23 = vector.load %arg7[%c0_20, %c0_21] : memref<1x50xf32, #tpu.memory_space<vmem>>, vector<1x50xf32>
      %24 = vector.broadcast %23 : vector<1x50xf32> to vector<2x50xf32>
      %25 = arith.addf %22, %24 : vector<2x50xf32>
      %cst_22 = arith.constant 0.000000e+00 : f32
      %26 = vector.broadcast %cst_22 : f32 to vector<2x50xf32>
      %27 = arith.maximumf %25, %26 : vector<2x50xf32>
      %c0_23 = arith.constant 0 : index
      %c0_24 = arith.constant 0 : index
      %28 = vector.load %arg8[%c0_23, %c0_24] : memref<50x2xf32, #tpu.memory_space<vmem>>, vector<50x2xf32>
      %cst_25 = arith.constant dense<0.000000e+00> : vector<2x2xf32>
      %29 = tpu.matmul %18, %28, %cst_25 {dimension_numbers = #tpu.dot_dimension_numbers<[1], [0], [0], [1], [0, 0, 1, 1], [], []>} : vector<2x50xf32>, vector<50x2xf32>, vector<2x2xf32> -> vector<2x2xf32>
      %c0_26 = arith.constant 0 : index
      %c0_27 = arith.constant 0 : index
      %30 = vector.load %arg9[%c0_26, %c0_27] : memref<50x2xf32, #tpu.memory_space<vmem>>, vector<50x2xf32>
      %cst_28 = arith.constant dense<0.000000e+00> : vector<2x2xf32>
      %31 = tpu.matmul %27, %30, %cst_28 {dimension_numbers = #tpu.dot_dimension_numbers<[1], [0], [0], [1], [0, 0, 1, 1], [], []>} : vector<2x50xf32>, vector<50x2xf32>, vector<2x2xf32> -> vector<2x2xf32>
      %32 = arith.addf %29, %31 : vector<2x2xf32>
      %c0_29 = arith.constant 0 : index
      %c0_30 = arith.constant 0 : index
      %33 = vector.load %arg10[%c0_29, %c0_30] : memref<1x2xf32, #tpu.memory_space<vmem>>, vector<1x2xf32>
      %34 = vector.broadcast %33 : vector<1x2xf32> to vector<2x2xf32>
      %35 = arith.addf %32, %34 : vector<2x2xf32>
      %cst_31 = arith.constant dense<0xFF800000> : vector<2xf32>
      %36 = vector.multi_reduction <maximumf>, %35, %cst_31 [1] : vector<2x2xf32> to vector<2xf32>
      %37 = vector.shape_cast %36 : vector<2xf32> to vector<2x1xf32>
      %38 = vector.broadcast %37 : vector<2x1xf32> to vector<2x2xf32>
      %39 = arith.subf %35, %38 : vector<2x2xf32>
      %40 = math.exp %39 : vector<2x2xf32>
      %cst_32 = arith.constant dense<0.000000e+00> : vector<2xf32>
      %41 = vector.multi_reduction <add>, %40, %cst_32 [1] : vector<2x2xf32> to vector<2xf32>
      %42 = vector.shape_cast %41 : vector<2xf32> to vector<2x1xf32>
      %43 = math.log %42 : vector<2x1xf32>
      %44 = vector.broadcast %43 : vector<2x1xf32> to vector<2x2xf32>
      %45 = arith.subf %39, %44 : vector<2x2xf32>
      %c0_33 = arith.constant 0 : index
      %c0_34 = arith.constant 0 : index
      %46 = vector.load %arg11[%c0_33, %c0_34] : memref<2x2xf32, #tpu.memory_space<vmem>>, vector<2x2xf32>
      tpu.vector_store %arg11[%c0_33, %c0_34], %45 {strides = array<i32>} : memref<2x2xf32, #tpu.memory_space<vmem>>, vector<2x2xf32>,
    } else {
    }
    return
  }
  func.func @transform_0(%arg0: i32, %arg1: i32) -> (i32, i32) {
    %c0_i32 = arith.constant 0 : i32
    return %arg0, %arg1 : i32, i32
  }
  func.func @transform_1(%arg0: i32, %arg1: i32) -> (i32, i32) {
    %c0_i32 = arith.constant 0 : i32
    %c0_i32_0 = arith.constant 0 : i32
    return %arg0, %c0_i32 : i32, i32
  }
  func.func @transform_2(%arg0: i32, %arg1: i32) -> (i32, i32) {
    %c0_i32 = arith.constant 0 : i32
    %c0_i32_0 = arith.constant 0 : i32
    return %arg1, %c0_i32 : i32, i32
  }
  func.func @transform_3(%arg0: i32, %arg1: i32) -> (i32, i32) {
    %c0_i32 = arith.constant 0 : i32
    %c0_i32_0 = arith.constant 0 : i32
    %c0_i32_1 = arith.constant 0 : i32
    return %c0_i32, %c0_i32_0 : i32, i32
  }
  func.func @transform_4(%arg0: i32, %arg1: i32) -> (i32, i32) {
    %c0_i32 = arith.constant 0 : i32
    %c0_i32_0 = arith.constant 0 : i32
    %c0_i32_1 = arith.constant 0 : i32
    return %c0_i32, %c0_i32_0 : i32, i32
  }
  func.func @transform_5(%arg0: i32, %arg1: i32) -> (i32, i32) {
    %c0_i32 = arith.constant 0 : i32
    %c0_i32_0 = arith.constant 0 : i32
    %c0_i32_1 = arith.constant 0 : i32
    return %c0_i32, %c0_i32_0 : i32, i32
  }
  func.func @transform_6(%arg0: i32, %arg1: i32) -> (i32, i32) {
    %c0_i32 = arith.constant 0 : i32
    %c0_i32_0 = arith.constant 0 : i32
    %c0_i32_1 = arith.constant 0 : i32
    return %c0_i32, %c0_i32_0 : i32, i32
  }
  func.func @transform_7(%arg0: i32, %arg1: i32) -> (i32, i32) {
    %c0_i32 = arith.constant 0 : i32
    %c0_i32_0 = arith.constant 0 : i32
    %c0_i32_1 = arith.constant 0 : i32
    return %c0_i32, %c0_i32_0 : i32, i32
  }
  func.func @transform_8(%arg0: i32, %arg1: i32) -> (i32, i32) {
    %c0_i32 = arith.constant 0 : i32
    %c0_i32_0 = arith.constant 0 : i32
    %c0_i32_1 = arith.constant 0 : i32
    return %c0_i32, %c0_i32_0 : i32, i32
  }
  func.func @transform_9(%arg0: i32, %arg1: i32) -> (i32, i32) {
    %c0_i32 = arith.constant 0 : i32
    %c0_i32_0 = arith.constant 0 : i32
    return %arg0, %c0_i32 : i32, i32
  }
}

module attributes {stable_mosaic.version = 11 : i64} {
  func.func @movienet_kernel(%arg0: i32, %arg1: i32, %arg2: memref<2x1024xf32, #tpu.memory_space<vmem>>, %arg3: memref<2x64xf32, #tpu.memory_space<vmem>>, %arg4: memref<1024x50xbf16, #tpu.memory_space<vmem>>, %arg5: memref<1x50xf32, #tpu.memory_space<vmem>>, %arg6: memref<64x50xbf16, #tpu.memory_space<vmem>>, %arg7: memref<1x50xf32, #tpu.memory_space<vmem>>, %arg8: memref<50x2xf32, #tpu.memory_space<vmem>>, %arg9: memref<50x2xf32, #tpu.memory_space<vmem>>, %arg10: memref<1x2xf32, #tpu.memory_space<vmem>>, %arg11: memref<2x2xf32, #tpu.memory_space<vmem>>, %arg12: memref<2x50xf32, #tpu.memory_space<vmem>>) attributes {dimension_semantics = [#tpu.dimension_semantics<parallel>, #tpu.dimension_semantics<arbitrary>], iteration_bounds = array<i64: 1, 1>, scalar_prefetch = 0 : i64, scratch_operands = 1 : i64, tpu.core_type = #tpu.core_type<tc>, window_params = [{transform_indices = @transform_0, window_bounds = array<i64: 2, 1024>}, {transform_indices = @transform_1, window_bounds = array<i64: 2, 64>}, {transform_indices = @transform_2, window_bounds = array<i64: 1024, 50>}, {pipeline_mode = #tpu.pipeline_mode<synchronous>, transform_indices = @transform_3, window_bounds = array<i64: 1, 50>}, {pipeline_mode = #tpu.pipeline_mode<synchronous>, transform_indices = @transform_4, window_bounds = array<i64: 64, 50>}, {pipeline_mode = #tpu.pipeline_mode<synchronous>, transform_indices = @transform_5, window_bounds = array<i64: 1, 50>}, {pipeline_mode = #tpu.pipeline_mode<synchronous>, transform_indices = @transform_6, window_bounds = array<i64: 50, 2>}, {pipeline_mode = #tpu.pipeline_mode<synchronous>, transform_indices = @transform_7, window_bounds = array<i64: 50, 2>}, {pipeline_mode = #tpu.pipeline_mode<synchronous>, transform_indices = @transform_8, window_bounds = array<i64: 1, 2>}, {transform_indices = @transform_9, window_bounds = array<i64: 2, 2>}]} {
    %c0_i32 = arith.constant 0 : i32
    %0 = arith.cmpi eq, %arg1, %c0_i32 : i32
    %1 = arith.extui %0 : i1 to i32
    %c0_i32_0 = arith.constant 0 : i32
    %2 = arith.cmpi ne, %1, %c0_i32_0 : i32
    scf.if %2 {
      %cst_10 = arith.constant 0.000000e+00 : f32
      %13 = vector.broadcast %cst_10 : f32 to vector<2x50xf32>
      %c0_11 = arith.constant 0 : index
      %c0_12 = arith.constant 0 : index
      %14 = vector.load %arg12[%c0_11, %c0_12] : memref<2x50xf32, #tpu.memory_space<vmem>>, vector<2x50xf32>
      tpu.vector_store %arg12[%c0_11, %c0_12], %13 {strides = array<i32>} : memref<2x50xf32, #tpu.memory_space<vmem>>, vector<2x50xf32>,
    } else {
    }
    %c0 = arith.constant 0 : index
    %c0_1 = arith.constant 0 : index
    %3 = vector.load %arg2[%c0, %c0_1] : memref<2x1024xf32, #tpu.memory_space<vmem>>, vector<2x1024xf32>
    %4 = arith.truncf %3 : vector<2x1024xf32> to vector<2x1024xbf16>
    %c0_2 = arith.constant 0 : index
    %c0_3 = arith.constant 0 : index
    %5 = vector.load %arg12[%c0_2, %c0_3] : memref<2x50xf32, #tpu.memory_space<vmem>>, vector<2x50xf32>
    %c0_4 = arith.constant 0 : index
    %c0_5 = arith.constant 0 : index
    %6 = vector.load %arg4[%c0_4, %c0_5] : memref<1024x50xbf16, #tpu.memory_space<vmem>>, vector<1024x50xbf16>
    %cst = arith.constant dense<0.000000e+00> : vector<2x50xf32>
    %7 = tpu.matmul %4, %6, %cst {dimension_numbers = #tpu.dot_dimension_numbers<[1], [0], [0], [1], [0, 0, 1, 1], [], []>} : vector<2x1024xbf16>, vector<1024x50xbf16>, vector<2x50xf32> -> vector<2x50xf32>
    %8 = arith.addf %5, %7 : vector<2x50xf32>
    %c0_6 = arith.constant 0 : index
    %c0_7 = arith.constant 0 : index
    %9 = vector.load %arg12[%c0_6, %c0_7] : memref<2x50xf32, #tpu.memory_space<vmem>>, vector<2x50xf32>
    tpu.vector_store %arg12[%c0_6, %c0_7], %8 {strides = array<i32>} : memref<2x50xf32, #tpu.memory_space<vmem>>, vector<2x50xf32>,
    %c0_i32_8 = arith.constant 0 : i32
    %10 = arith.cmpi eq, %arg1, %c0_i32_8 : i32
    %11 = arith.extui %10 : i1 to i32
    %c0_i32_9 = arith.constant 0 : i32
    %12 = arith.cmpi ne, %11, %c0_i32_9 : i32
    scf.if %12 {
      %c0_10 = arith.constant 0 : index
      %c0_11 = arith.constant 0 : index
      %13 = vector.load %arg12[%c0_10, %c0_11] : memref<2x50xf32, #tpu.memory_space<vmem>>, vector<2x50xf32>
      %c0_12 = arith.constant 0 : index
      %c0_13 = arith.constant 0 : index
      %14 = vector.load %arg5[%c0_12, %c0_13] : memref<1x50xf32, #tpu.memory_space<vmem>>, vector<1x50xf32>
      %15 = vector.broadcast %14 : vector<1x50xf32> to vector<2x50xf32>
      %16 = arith.addf %13, %15 : vector<2x50xf32>
      %cst_14 = arith.constant 0.000000e+00 : f32
      %17 = vector.broadcast %cst_14 : f32 to vector<2x50xf32>
      %18 = arith.maximumf %16, %17 : vector<2x50xf32>
      %c0_15 = arith.constant 0 : index
      %c0_16 = arith.constant 0 : index
      %19 = vector.load %arg3[%c0_15, %c0_16] : memref<2x64xf32, #tpu.memory_space<vmem>>, vector<2x64xf32>
      %20 = arith.truncf %19 : vector<2x64xf32> to vector<2x64xbf16>
      %c0_17 = arith.constant 0 : index
      %c0_18 = arith.constant 0 : index
      %21 = vector.load %arg6[%c0_17, %c0_18] : memref<64x50xbf16, #tpu.memory_space<vmem>>, vector<64x50xbf16>
      %cst_19 = arith.constant dense<0.000000e+00> : vector<2x50xf32>
      %22 = tpu.matmul %20, %21, %cst_19 {dimension_numbers = #tpu.dot_dimension_numbers<[1], [0], [0], [1], [0, 0, 1, 1], [], []>} : vector<2x64xbf16>, vector<64x50xbf16>, vector<2x50xf32> -> vector<2x50xf32>
      %c0_20 = arith.constant 0 : index
      %c0_21 = arith.constant 0 : index
      %23 = vector.load %arg7[%c0_20, %c0_21] : memref<1x50xf32, #tpu.memory_space<vmem>>, vector<1x50xf32>
      %24 = vector.broadcast %23 : vector<1x50xf32> to vector<2x50xf32>
      %25 = arith.addf %22, %24 : vector<2x50xf32>
      %cst_22 = arith.constant 0.000000e+00 : f32
      %26 = vector.broadcast %cst_22 : f32 to vector<2x50xf32>
      %27 = arith.maximumf %25, %26 : vector<2x50xf32>
      %c0_23 = arith.constant 0 : index
      %c0_24 = arith.constant 0 : index
      %28 = vector.load %arg8[%c0_23, %c0_24] : memref<50x2xf32, #tpu.memory_space<vmem>>, vector<50x2xf32>
      %cst_25 = arith.constant dense<0.000000e+00> : vector<2x2xf32>
      %29 = tpu.matmul %18, %28, %cst_25 {dimension_numbers = #tpu.dot_dimension_numbers<[1], [0], [0], [1], [0, 0, 1, 1], [], []>} : vector<2x50xf32>, vector<50x2xf32>, vector<2x2xf32> -> vector<2x2xf32>
      %c0_26 = arith.constant 0 : index
      %c0_27 = arith.constant 0 : index
      %30 = vector.load %arg9[%c0_26, %c0_27] : memref<50x2xf32, #tpu.memory_space<vmem>>, vector<50x2xf32>
      %cst_28 = arith.constant dense<0.000000e+00> : vector<2x2xf32>
      %31 = tpu.matmul %27, %30, %cst_28 {dimension_numbers = #tpu.dot_dimension_numbers<[1], [0], [0], [1], [0, 0, 1, 1], [], []>} : vector<2x50xf32>, vector<50x2xf32>, vector<2x2xf32> -> vector<2x2xf32>
      %32 = arith.addf %29, %31 : vector<2x2xf32>
      %c0_29 = arith.constant 0 : index
      %c0_30 = arith.constant 0 : index
      %33 = vector.load %arg10[%c0_29, %c0_30] : memref<1x2xf32, #tpu.memory_space<vmem>>, vector<1x2xf32>
      %34 = vector.broadcast %33 : vector<1x2xf32> to vector<2x2xf32>
      %35 = arith.addf %32, %34 : vector<2x2xf32>
      %cst_31 = arith.constant dense<0xFF800000> : vector<2xf32>
      %36 = vector.multi_reduction <maximumf>, %35, %cst_31 [1] : vector<2x2xf32> to vector<2xf32>
      %37 = vector.shape_cast %36 : vector<2xf32> to vector<2x1xf32>
      %38 = vector.broadcast %37 : vector<2x1xf32> to vector<2x2xf32>
      %39 = arith.subf %35, %38 : vector<2x2xf32>
      %40 = math.exp %39 : vector<2x2xf32>
      %cst_32 = arith.constant dense<0.000000e+00> : vector<2xf32>
      %41 = vector.multi_reduction <add>, %40, %cst_32 [1] : vector<2x2xf32> to vector<2xf32>
      %42 = vector.shape_cast %41 : vector<2xf32> to vector<2x1xf32>
      %43 = math.log %42 : vector<2x1xf32>
      %44 = vector.broadcast %43 : vector<2x1xf32> to vector<2x2xf32>
      %45 = arith.subf %39, %44 : vector<2x2xf32>
      %c0_33 = arith.constant 0 : index
      %c0_34 = arith.constant 0 : index
      %46 = vector.load %arg11[%c0_33, %c0_34] : memref<2x2xf32, #tpu.memory_space<vmem>>, vector<2x2xf32>
      tpu.vector_store %arg11[%c0_33, %c0_34], %45 {strides = array<i32>} : memref<2x2xf32, #tpu.memory_space<vmem>>, vector<2x2xf32>,
    } else {
    }
    return
  }
  func.func @transform_0(%arg0: i32, %arg1: i32) -> (i32, i32) {
    %c0_i32 = arith.constant 0 : i32
    return %arg0, %arg1 : i32, i32
  }
  func.func @transform_1(%arg0: i32, %arg1: i32) -> (i32, i32) {
    %c0_i32 = arith.constant 0 : i32
    %c0_i32_0 = arith.constant 0 : i32
    return %arg0, %c0_i32 : i32, i32
  }
  func.func @transform_2(%arg0: i32, %arg1: i32) -> (i32, i32) {
    %c0_i32 = arith.constant 0 : i32
    %c0_i32_0 = arith.constant 0 : i32
    return %arg1, %c0_i32 : i32, i32
  }
  func.func @transform_3(%arg0: i32, %arg1: i32) -> (i32, i32) {
    %c0_i32 = arith.constant 0 : i32
    %c0_i32_0 = arith.constant 0 : i32
    %c0_i32_1 = arith.constant 0 : i32
    return %c0_i32, %c0_i32_0 : i32, i32
  }
  func.func @transform_4(%arg0: i32, %arg1: i32) -> (i32, i32) {
    %c0_i32 = arith.constant 0 : i32
    %c0_i32_0 = arith.constant 0 : i32
    %c0_i32_1 = arith.constant 0 : i32
    return %c0_i32, %c0_i32_0 : i32, i32
  }
  func.func @transform_5(%arg0: i32, %arg1: i32) -> (i32, i32) {
    %c0_i32 = arith.constant 0 : i32
    %c0_i32_0 = arith.constant 0 : i32
    %c0_i32_1 = arith.constant 0 : i32
    return %c0_i32, %c0_i32_0 : i32, i32
  }
  func.func @transform_6(%arg0: i32, %arg1: i32) -> (i32, i32) {
    %c0_i32 = arith.constant 0 : i32
    %c0_i32_0 = arith.constant 0 : i32
    %c0_i32_1 = arith.constant 0 : i32
    return %c0_i32, %c0_i32_0 : i32, i32
  }
  func.func @transform_7(%arg0: i32, %arg1: i32) -> (i32, i32) {
    %c0_i32 = arith.constant 0 : i32
    %c0_i32_0 = arith.constant 0 : i32
    %c0_i32_1 = arith.constant 0 : i32
    return %c0_i32, %c0_i32_0 : i32, i32
  }
  func.func @transform_8(%arg0: i32, %arg1: i32) -> (i32, i32) {
    %c0_i32 = arith.constant 0 : i32
    %c0_i32_0 = arith.constant 0 : i32
    %c0_i32_1 = arith.constant 0 : i32
    return %c0_i32, %c0_i32_0 : i32, i32
  }
  func.func @transform_9(%arg0: i32, %arg1: i32) -> (i32, i32) {
    %c0_i32 = arith.constant 0 : i32
    %c0_i32_0 = arith.constant 0 : i32
    return %arg0, %c0_i32 : i32, i32
  }
}

</mosaic_0001>

<bundles_post_ra>
// kernel: tpu_custom_call.1
= control target key start
LH: loop header
LB: loop body
LE: loop exit
PB: predicated region body
PF: predicated region fallthrough
CT: control target
= control target key end

     0   :  { %v48_v28 = vlaneseq  ;;  %v1425_v36 = vmov 1983009808   ;;  %s1790_s0 = inlined_call_operand.vmem [shape: f32[2,1024], index: 0, kind: input, shape index: {}]   ;;  %s1791_s1 = inlined_call_operand.vmem [shape: f32[2,64], index: 1, kind: input, shape index: {}]   ;;  %s1792_s2 = inlined_call_operand.vmem [shape: bf16[1024,50], index: 2, kind: input, shape index: {}]   ;;  %s1793_s3 = inlined_call_operand.vmem [shape: f32[1,50], index: 3, kind: input, shape index: {}]   ;;  %s1794_s4 = inlined_call_operand.vmem [shape: bf16[64,50], index: 4, kind: input, shape index: {}]   ;;  %s1795_s5 = inlined_call_operand.vmem [shape: f32[1,50], index: 5, kind: input, shape index: {}]   ;;  %s1796_s6 = inlined_call_operand.vmem [shape: f32[50,2], index: 6, kind: input, shape index: {}]   ;;  %s1797_s7 = inlined_call_operand.vmem [shape: f32[50,2], index: 7, kind: input, shape index: {}]   ;;  %s1798_s8 = inlined_call_operand.vmem [shape: f32[1,2], index: 8, kind: input, shape index: {}]   ;;  %s1799_s9 = inlined_call_operand.hbm [shape: f32[2,2], index: 9, kind: output, shape index: {}]  }
   0x1   :  { %v1327_v0 = vld [vmem:[%s1792_s2 + $0x40] sm:$0xff]   ;;  %v1331_v4 = vld [vmem:[%s1792_s2 + $0x48] sm:$0xff]   ;;  %v1335_v8 = vld [vmem:[%s1792_s2 + $0x50] sm:$0xff]   ;;  %v46_v37 = vunpack.c.l.s4 %v1425_v36 }
   0x2   :  { %v1328_v1 = vld [vmem:[%s1792_s2 + $0xc0] sm:$0xff]   ;;  %1149 = vmatprep.subr.bf16.mxu0 %v1327_v0  ;;  %v1332_v5 = vld [vmem:[%s1792_s2 + $0xc8] sm:$0xff]   ;;  %v1336_v9 = vld [vmem:[%s1792_s2 + $0xd0] sm:$0xff]   ;;  %v49_v33 = vshrl.u32 %v48_v28, 7 }
   0x3   :  { %v1329_v2 = vld [vmem:[%s1792_s2] sm:$0xff]   ;;  %1171 = vmatprep.subr.bf16.mxu1 %v1328_v1  ;;  %v1333_v6 = vld [vmem:[%s1792_s2 + $0x8] sm:$0xff]   ;;  %v1337_v10 = vld [vmem:[%s1792_s2 + $0x10] sm:$0xff]   ;;  %v47_v38 = vunpack.c.0.s8 %v46_v37 }
   0x4   :  { %v1330_v3 = vld [vmem:[%s1792_s2 + $0x80] sm:$0xff]   ;;  %1150 = vmatpush3.bf16.msra.mxu0 %v1329_v2  ;;  %v1334_v7 = vld [vmem:[%s1792_s2 + $0x88] sm:$0xff]   ;;  %v1338_v11 = vld [vmem:[%s1792_s2 + $0x90] sm:$0xff]  }
   0x5   :  { %1172 = vmatpush3.bf16.msra.mxu1 %v1330_v3  ;;  %1151 = vmatprep.subr.bf16.mxu0 %v1331_v4  ;;  %v1339_v12 = vld [vmem:[%s1792_s2 + $0x58] sm:$0xff]   ;;  %v1343_v16 = vld [vmem:[%s1792_s2 + $0x60] sm:$0xff]   ;;  %v1347_v20 = vld [vmem:[%s1792_s2 + $0x68] sm:$0xff]   ;;  %v1585_v41 = vsub.s32 %v47_v38, %v49_v33 }
   0x6   :  { %1173 = vmatprep.subr.bf16.mxu1 %v1332_v5  ;;  %v1340_v13 = vld [vmem:[%s1792_s2 + $0xd8] sm:$0xff]   ;;  %v1344_v17 = vld [vmem:[%s1792_s2 + $0xe0] sm:$0xff]   ;;  %v1348_v21 = vld [vmem:[%s1792_s2 + $0xe8] sm:$0xff]  }
   0x7   :  { %v1341_v14 = vld [vmem:[%s1792_s2 + $0x18] sm:$0xff]   ;;  %v1345_v18 = vld [vmem:[%s1792_s2 + $0x20] sm:$0xff]   ;;  %v1349_v22 = vld [vmem:[%s1792_s2 + $0x28] sm:$0xff]  }
   0x8   :  { %1152 = vmatpush3.bf16.msra.mxu0 %v1333_v6  ;;  %v1342_v15 = vld [vmem:[%s1792_s2 + $0x98] sm:$0xff]   ;;  %v1346_v19 = vld [vmem:[%s1792_s2 + $0xa0] sm:$0xff]   ;;  %v1350_v23 = vld [vmem:[%s1792_s2 + $0xa8] sm:$0xff]  }
   0x9   :  { %1174 = vmatpush3.bf16.msra.mxu1 %v1334_v7  ;;  %1153 = vmatprep.subr.bf16.mxu0 %v1335_v8  ;;  %v1351_v24 = vld [vmem:[%s1792_s2 + $0x70] sm:$0xff]   ;;  %v1355_v29 = vld [vmem:[%s1792_s2 + $0x78] sm:$0xff]   ;;  %v40_v34 = vld [vmem:[%s1790_s0] sm:$0xff] }
   0xa   :  { %1175 = vmatprep.subr.bf16.mxu1 %v1336_v9  ;;  %v1352_v25 = vld [vmem:[%s1792_s2 + $0xf0] sm:$0xff]   ;;  %v1356_v30 = vld [vmem:[%s1792_s2 + $0xf8] sm:$0xff]   ;;  %v1360_v35 = vld [vmem:[%s1792_s2 + $0x140] sm:$0xff]   ;;  %v44_v39 = vcombine.high %v40_v34, %v40_v34  ;;  %v51_v42 = vrot.slane %v40_v34, %v1585_v41 }
   0xb   :  { %v1353_v26 = vld [vmem:[%s1792_s2 + $0x30] sm:$0xff]   ;;  %v1357_v31 = vld [vmem:[%s1792_s2 + $0x38] sm:$0xff]   ;;  %v1362_v40 = vld [vmem:[%s1792_s2 + $0x1c0] sm:$0xff]  }
   0xc   :  { %1154 = vmatpush3.bf16.msra.mxu0 %v1337_v10  ;;  %v1354_v27 = vld [vmem:[%s1792_s2 + $0xb0] sm:$0xff]   ;;  %v1358_v32 = vld [vmem:[%s1792_s2 + $0xb8] sm:$0xff]   ;;  %v58_v43 = vrot.slane %v44_v39, %v1585_v41  ;;  %v59_v44 = vcombine.high %v51_v42, %v51_v42  ;;  %v1361_v46 = vld [vmem:[%s1792_s2 + $0x100] sm:$0xff]   ;;  %v86_v47 = vpack.c.bf16 %v51_v42, %v51_v42 }
   0xd   :  { %1176 = vmatpush3.bf16.msra.mxu1 %v1338_v11  ;;  %1155 = vmatprep.subr.bf16.mxu0 %v1339_v12  ;;  %v1363_v49 = vld [vmem:[%s1792_s2 + $0x180] sm:$0xff]   ;;  %v1364_v52 = vld [vmem:[%s1792_s2 + $0x148] sm:$0xff]   ;;  %v1368_v56 = vld [vmem:[%s1792_s2 + $0x150] sm:$0xff]  }
   0xe   :  { %1177 = vmatprep.subr.bf16.mxu1 %v1340_v13  ;;  %v60_v45 = vcombine.high %v58_v43, %v58_v43  ;;  %v88_v48 = vpack.c.bf16 %v58_v43, %v58_v43  ;;  %v87_v50 = vpack.c.bf16 %v59_v44, %v59_v44  ;;  %v1366_v53 = vld [vmem:[%s1792_s2 + $0x1c8] sm:$0xff]   ;;  %v1370_v57 = vld [vmem:[%s1792_s2 + $0x1d0] sm:$0xff]   ;;  %v1372_v60 = vld [vmem:[%s1792_s2 + $0x158] sm:$0xff]  }
   0xf   :  { %v1365_v54 = vld [vmem:[%s1792_s2 + $0x108] sm:$0xff]   ;;  %v1369_v58 = vld [vmem:[%s1792_s2 + $0x110] sm:$0xff]   ;;  %v1374_v61 = vld [vmem:[%s1792_s2 + $0x1d8] sm:$0xff]  }
  0x10   :  { %1156 = vmatpush3.bf16.msra.mxu0 %v1341_v14  ;;  %v89_v51 = vpack.c.bf16 %v60_v45, %v60_v45  ;;  %639 = vmatprep.mubr.bf16.mxu0 %v87_v50  ;;  %v1367_v55 = vld [vmem:[%s1792_s2 + $0x188] sm:$0xff]   ;;  %v1371_v59 = vld [vmem:[%s1792_s2 + $0x190] sm:$0xff]   ;;  %v1373_v62 = vld [vmem:[%s1792_s2 + $0x118] sm:$0xff]  }
  0x11   :  { %1178 = vmatpush3.bf16.msra.mxu1 %v1342_v15  ;;  %1157 = vmatprep.subr.bf16.mxu0 %v1343_v16  ;;  %v1375_v63 = vld [vmem:[%s1792_s2 + $0x198] sm:$0xff]   ;;  %v1376_v0 = vld [vmem:[%s1792_s2 + $0x160] sm:$0xff]   ;;  %v1380_v4 = vld [vmem:[%s1792_s2 + $0x168] sm:$0xff]  }
  0x12   :  { %1179 = vmatprep.subr.bf16.mxu1 %v1344_v17  ;;  %679 = vmatprep.mubr.bf16.mxu1 %v89_v51  ;;  %v1378_v1 = vld [vmem:[%s1792_s2 + $0x1e0] sm:$0xff]   ;;  %v1382_v5 = vld [vmem:[%s1792_s2 + $0x1e8] sm:$0xff]   ;;  %v1384_v8 = vld [vmem:[%s1792_s2 + $0x170] sm:$0xff]  }
  0x13   :  { %v1377_v2 = vld [vmem:[%s1792_s2 + $0x120] sm:$0xff]   ;;  %v1381_v6 = vld [vmem:[%s1792_s2 + $0x128] sm:$0xff]   ;;  %v1386_v10 = vld [vmem:[%s1792_s2 + $0x1f0] sm:$0xff]  }
  0x14   :  { %1158 = vmatpush3.bf16.msra.mxu0 %v1345_v18  ;;  %v1379_v3 = vld [vmem:[%s1792_s2 + $0x1a0] sm:$0xff]   ;;  %v1383_v7 = vld [vmem:[%s1792_s2 + $0x1a8] sm:$0xff]   ;;  %v1385_v13 = vld [vmem:[%s1792_s2 + $0x130] sm:$0xff]  }
  0x15   :  { %1180 = vmatpush3.bf16.msra.mxu1 %v1346_v19  ;;  %1159 = vmatprep.subr.bf16.mxu0 %v1347_v20  ;;  %v41_v9 = vld [vmem:[%s1790_s0 + $0x8] sm:$0xff]  ;;  %v1387_v16 = vld [vmem:[%s1792_s2 + $0x1b0] sm:$0xff]   ;;  %v1388_v17 = vld [vmem:[%s1792_s2 + $0x178] sm:$0xff]  }
  0x16   :  { %1181 = vmatprep.subr.bf16.mxu1 %v1348_v21  ;;  %v68_v11 = vrot.slane %v41_v9, %v1585_v41  ;;  %v61_v12 = vcombine.high %v41_v9, %v41_v9  ;;  %v1390_v18 = vld [vmem:[%s1792_s2 + $0x1f8] sm:$0xff]  }
  0x18   :  { %1160 = vmatpush3.bf16.msra.mxu0 %v1349_v22  ;;  %v76_v14 = vcombine.high %v68_v11, %v68_v11  ;;  %v75_v15 = vrot.slane %v61_v12, %v1585_v41 }
  0x19   :  { %1182 = vmatpush3.bf16.msra.mxu1 %v1350_v23  ;;  %1161 = vmatprep.subr.bf16.mxu0 %v1351_v24 }
  0x1a   :  { %1183 = vmatprep.subr.bf16.mxu1 %v1352_v25  ;;  %v91_v19 = vpack.c.bf16 %v76_v14, %v76_v14  ;;  %v77_v20 = vcombine.high %v75_v15, %v75_v15 }
  0x1c   :  { %1162 = vmatpush3.bf16.msra.mxu0 %v1353_v26 }
  0x1d   :  { %1184 = vmatpush3.bf16.msra.mxu1 %v1354_v27  ;;  %1163 = vmatprep.subr.bf16.mxu0 %v1355_v29 }
  0x1e   :  { %1185 = vmatprep.subr.bf16.mxu1 %v1356_v30 }
  0x20   :  { %1164 = vmatpush3.bf16.msra.mxu0 %v1357_v31 }
  0x21   :  { %1186 = vmatpush3.bf16.msra.mxu1 %v1358_v32  ;;  %1193 = vmatprep.subr.bf16.mxu0 %v1360_v35 }
  0x22   :  { %1215 = vmatprep.subr.bf16.mxu1 %v1362_v40 }
  0x23   :  { %640 = vmatmul.mubr.bf16.vlgmr.msra.gmra.mrb[0].mxu0 %v86_v47 }
  0x24   :  { %680 = vmatmul.mubr.bf16.vlgmr.msra.gmra.mrb[0].mxu1 %v88_v48  ;;  %1194 = vmatpush3.bf16.msra.mxu0 %v1361_v46 }
  0x25   :  { %1216 = vmatpush3.bf16.msra.mxu1 %v1363_v49  ;;  %1195 = vmatprep.subr.bf16.mxu0 %v1364_v52 }
  0x26   :  { %1217 = vmatprep.subr.bf16.mxu1 %v1366_v53 }
  0x28   :  { %1196 = vmatpush3.bf16.msra.mxu0 %v1365_v54 }
  0x29   :  { %1218 = vmatpush3.bf16.msra.mxu1 %v1367_v55  ;;  %1197 = vmatprep.subr.bf16.mxu0 %v1368_v56 }
  0x2a   :  { %1219 = vmatprep.subr.bf16.mxu1 %v1370_v57 }
  0x2c   :  { %1198 = vmatpush3.bf16.msra.mxu0 %v1369_v58 }
  0x2d   :  { %1220 = vmatpush3.bf16.msra.mxu1 %v1371_v59  ;;  %1199 = vmatprep.subr.bf16.mxu0 %v1372_v60 }
  0x2e   :  { %1221 = vmatprep.subr.bf16.mxu1 %v1374_v61 }
  0x30   :  { %1200 = vmatpush3.bf16.msra.mxu0 %v1373_v62 }
  0x31   :  { %1222 = vmatpush3.bf16.msra.mxu1 %v1375_v63  ;;  %1201 = vmatprep.subr.bf16.mxu0 %v1376_v0 }
  0x32   :  { %1223 = vmatprep.subr.bf16.mxu1 %v1378_v1 }
  0x34   :  { %1202 = vmatpush3.bf16.msra.mxu0 %v1377_v2 }
  0x35   :  { %1224 = vmatpush3.bf16.msra.mxu1 %v1379_v3  ;;  %1203 = vmatprep.subr.bf16.mxu0 %v1380_v4 }
  0x36   :  { %1225 = vmatprep.subr.bf16.mxu1 %v1382_v5 }
  0x38   :  { %1204 = vmatpush3.bf16.msra.mxu0 %v1381_v6 }
  0x39   :  { %1226 = vmatpush3.bf16.msra.mxu1 %v1383_v7  ;;  %1205 = vmatprep.subr.bf16.mxu0 %v1384_v8 }
  0x3a   :  { %1227 = vmatprep.subr.bf16.mxu1 %v1386_v10 }
  0x3b   :  { %14 = vsyncpa [#allocation4], 0  ;;  %719 = vmatprep.mubr.bf16.mxu0 %v91_v19  ;;  %v93_v21 = vpack.c.bf16 %v77_v20, %v77_v20  ;;  %v1389_v22 = vld [vmem:[%s1792_s2 + $0x138] sm:$0xff]   ;;  %v90_v24 = vpack.c.bf16 %v68_v11, %v68_v11  ;;  %v92_v25 = vpack.c.bf16 %v75_v15, %v75_v15  ;;  %v1393_v26 = vld [vmem:[%s1794_s4] sm:$0xff]   ;;  %v1426_v27 = vmov 0.0  }
  0x3c   :  { %1206 = vmatpush3.bf16.msra.mxu0 %v1385_v13  ;;  %v1391_v23 = vld [vmem:[%s1792_s2 + $0x1b8] sm:$0xff]   ;;  %v1394_v28 = vld [vmem:[%s1794_s4 + $0x8] sm:$0xff]   ;;  %vm1427_vm0 = vmmov 0   ;;  %v1395_v29 = vld [vmem:[%s1794_s4 + $0x10] sm:$0xff]   ;;  %vm824_vm1 = vcmask 523264   ;;  %vm38_vm2 = vcmask 402432  }
  0x3d   :  { %1228 = vmatpush3.bf16.msra.mxu1 %v1387_v16  ;;  %1207 = vmatprep.subr.bf16.mxu0 %v1388_v17  ;;  %v1396_v30 = vld [vmem:[%s1794_s4 + $0x18] sm:$0xff]   ;;  %v783_v31 = vld [vmem:[%s1791_s1] sm:$0x3]  ;;  %39 = vst.msk [vmem:[#allocation2] sm:$0x3] %vm38_vm2, %v1426_v27  ;;  %v877_v34 = vld [vmem:[%s1797_s7 + $0x8] sm:$0xff] }
  0x3e   :  { %1229 = vmatprep.subr.bf16.mxu1 %v1390_v18  ;;  %759 = vmatprep.mubr.bf16.mxu1 %v93_v21  ;;  %v784_v32 = vpack.c.bf16 %v783_v31, %v783_v31  ;;  %v876_v33 = vld [vmem:[%s1797_s7] sm:$0xff]  ;;  %v1428_v36 = vmov 0.0|0.0   ;;  %v878_v37 = vld [vmem:[%s1797_s7 + $0x10] sm:$0xff]  ;;  %v879_v38 = vld [vmem:[%s1797_s7 + $0x18] sm:$0xff]  ;;  %vm887_vm3 = vcmask 1041408   ;;  %vm883_vm4 = vcmask 408576  }
  0x3f   :  { %v1305_v35 = vpack.c.bf16 %v877_v34, %v876_v33  ;;  %v1308_v39 = vpack.c.bf16 %v879_v38, %v878_v37  ;;  %v880_v40 = vld [vmem:[%s1797_s7 + $0x20] sm:$0xff]  ;;  %v881_v41 = vld [vmem:[%s1797_s7 + $0x28] sm:$0xff]  ;;  %v882_v43 = vld [vmem:[%s1797_s7 + $0x30] sm:$0x3]  ;;  %vm1045_vm5 = vcmask 9216  }
  0x40   :  { %1208 = vmatpush3.bf16.msra.mxu0 %v1389_v22  ;;  %v1311_v42 = vpack.c.bf16 %v881_v41, %v880_v40  ;;  %v1138_v5 = vld [vmem:[%s1795_s5] ss:$0 sm:$0xff]  ;;  %v870_v7 = vld [vmem:[%s1796_s6 + $0x8] sm:$0xff]  ;;  %v871_v15 = vld [vmem:[%s1796_s6 + $0x10] sm:$0xff] }
  0x41   :  { %1230 = vmatpush3.bf16.msra.mxu1 %v1391_v23  ;;  %1258 = vmatprep.subr.bf16.mxu0 %v1426_v27  ;;  %v869_v6 = vld [vmem:[%s1796_s6] sm:$0xff]  ;;  %v872_v16 = vld [vmem:[%s1796_s6 + $0x18] sm:$0xff]  ;;  %v874_v19 = vld [vmem:[%s1796_s6 + $0x28] sm:$0xff] }
  0x42   :  { %1304 = vmatprep.subr.bf16.mxu1 %v1428_v36  ;;  %v1314_v12 = vpack.c.bf16 %v870_v7, %v869_v6  ;;  %v1317_v17 = vpack.c.bf16 %v872_v16, %v871_v15  ;;  %v873_v18 = vld [vmem:[%s1796_s6 + $0x20] sm:$0xff] }
  0x43   :  { %720 = vmatmul.mubr.bf16.vlgmr.msra.gmra.mrb[4].mxu0 %v90_v24  ;;  %v1320_v20 = vpack.c.bf16 %v874_v19, %v873_v18  ;;  %v1137_v22 = vld [vmem:[%s1793_s3] ss:$0 sm:$0xff]  ;;  %v875_v24 = vld [vmem:[%s1796_s6 + $0x30] sm:$0x3]  ;;  %s1429_s6 = smov [#allocation3]  }
  0x44   :  { %760 = vmatmul.mubr.bf16.vlgmr.msra.gmra.mrb[4].mxu1 %v92_v25  ;;  %1259 = vmatpush3.bf16.msra.mxu0 %v1393_v26  ;;  %v94_v2 = vld [vmem:[#allocation2] sm:$0x3] }
  0x45   :  { %1266 = vmatprep.mubr.msk.bf16.mxu0 %vm1427_vm0, %v1426_v27  ;;  %1260 = vmatprep.subr.bf16.mxu0 %v1426_v27 }
  0x46   :  { %1284 = vmatprep.mubr.msk.f32.mxu1 %vm1427_vm0, %v1426_v27  ;;  %1306 = vmatpush3.bf16.msra.mxu1 %v1305_v35 }
  0x47   :  { %1307 = vmatprep.subr.bf16.mxu1 %v1428_v36 }
  0x48   :  { %1261 = vmatpush3.bf16.msra.mxu0 %v1394_v28 }
  0x49   :  { %1262 = vmatprep.subr.bf16.mxu0 %v1426_v27 }
  0x4a   :  { %1309 = vmatpush3.bf16.msra.mxu1 %v1308_v39 }
  0x4b   :  { %1310 = vmatprep.subr.bf16.mxu1 %v1428_v36 }
  0x4c   :  { %1263 = vmatpush3.bf16.msra.mxu0 %v1395_v29 }
  0x4d   :  { %1264 = vmatprep.subr.bf16.mxu0 %v1426_v27 }
  0x4e   :  { %1312 = vmatpush3.bf16.msra.mxu1 %v1311_v42 }
  0x4f   :  { %1282 = vmatprep.subr.mxu1 %v1426_v27 }
  0x50   :  { %1265 = vmatpush3.bf16.msra.mxu0 %v1396_v30  ;;  %v1148_v30 = vld [vmem:[%s1798_s8] ss:$0 sm:$0xff]  ;;  %s1065_s8 = sshll.u32 %s1429_s6, 4  ;;  %s1066_s8 = int_to_ptr.vmem [resolvable:$true] %s1065_s8 }
  0x51   :  { %s1401_s0 = scalar_lea.vmem %s1066_s8, 32  ;;  %p1406_p1 = scmp.lt.s32.totalorder %s1066_s8, %s1066_s8 }
  0x52   :  { %1283 = vmatpush3.msk.msra.mxu1 %vm887_vm3, %v882_v43  ;;  %p1402_p0 = scmp.ne.s32.totalorder %s1066_s8, %s1401_s0  ;;  %p1407_p2 = scmp.lt.s32.totalorder %s1401_s0, %s1401_s0 }
  0x53   :  { %1267 = vmatmul.mubr.msk.bf16.vlgmr.msra.gmra.mrb[8].mxu0 %vm824_vm1, %v784_v32  ;;  %1313 = vmatprep.subr.bf16.mxu1 %v1428_v36 }
  0x54   :  { %p1408_p3 = por %p1407_p2, %p1406_p1 }
  0x56   :  { %p1409_p4 = pnand %p1408_p3, %p1402_p0 }
  0xf6   :  { %v1165_v44 = vpop.f32.mrb[0].mxu0 }
  0xf7   :  { %v1187_v45 = vpop.f32.mrb[0].mxu1  ;;  %v1166_v46 = vpop.f32.mrb[1].mxu0 }
  0xf8   :  { %v1188_v47 = vpop.f32.mrb[1].mxu1  ;;  %v1167_v48 = vadd.f32 %v1166_v46, %v1165_v44  ;;  %v1168_v50 = vpop.f32.mrb[2].mxu0 }
  0xf9   :  { %v1189_v49 = vadd.f32 %v1188_v47, %v1187_v45  ;;  %v1190_v51 = vpop.f32.mrb[2].mxu1  ;;  %v1169_v52 = vpop.f32.mrb[3].mxu0 }
  0xfa   :  { %v1191_v53 = vpop.f32.mrb[3].mxu1 }
  0xfb   :  { %v682_v54 = vadd.f32 %v1189_v49, %v1167_v48 }
 0x116   :  { %v1209_v55 = vpop.f32.mrb[4].mxu0 }
 0x117   :  { %v1231_v56 = vpop.f32.mrb[4].mxu1  ;;  %v1210_v57 = vpop.f32.mrb[5].mxu0 }
 0x118   :  { %v1232_v58 = vpop.f32.mrb[5].mxu1  ;;  %v1211_v59 = vadd.f32 %v1210_v57, %v1209_v55  ;;  %v1212_v60 = vpop.f32.mrb[6].mxu0 }
 0x119   :  { %v1233_v61 = vadd.f32 %v1232_v58, %v1231_v56  ;;  %v1234_v62 = vpop.f32.mrb[6].mxu1  ;;  %v1213_v63 = vpop.f32.mrb[7].mxu0 }
 0x11a   :  { %v1235_v0 = vpop.f32.mrb[7].mxu1  ;;  %v722_v1 = vadd.f32 %v1211_v59, %v682_v54 }
 0x11c   :  { %v762_v3 = vadd.f32 %v1233_v61, %v722_v1 }
 0x11e   :  { %v767_v4 = vadd.f32 %v762_v3, %v94_v2 }
 0x120   :  { %769 = vst.msk [vmem:[#allocation2] sm:$0x3] %vm38_vm2, %v767_v4 }
 0x126   :  { %v862_v8 = vpop.f32.mrb[8].mxu0 }
 0x127   :  { %v863_v9 = vadd.f32 %v1138_v5, %v862_v8  ;;  %v1268_v10 = vpop.f32.mrb[9].mxu0  ;;  %v773_v21 = vld [vmem:[#allocation2] sm:$0x3] }
 0x128   :  { %v865_v11 = vpop.f32.mrb[10].mxu0  ;;  %v781_v23 = vadd.f32 %v1137_v22, %v773_v21 }
 0x129   :  { %v868_v13 = vmax.f32 %v863_v9, 0.0  ;;  %v1269_v14 = vpop.f32.mrb[11].mxu0 }
 0x12a   :  { %v782_v25 = vmax.f32 %v781_v23, 0.0 }
 0x12b   :  { %1285 = vmatmul.mubr.msk.f32.vlgmr.msra.gmra.mrb[8].mxu1 %vm883_vm4, %v868_v13 }
 0x12c   :  { %1315 = vmatpush3.bf16.msra.mxu1 %v1314_v12  ;;  %1301 = vmatprep.mubr.msk.f32.mxu1 %vm1427_vm0, %v1426_v27 }
 0x12d   :  { %1316 = vmatprep.subr.bf16.mxu1 %v1428_v36 }
 0x130   :  { %1318 = vmatpush3.bf16.msra.mxu1 %v1317_v17 }
 0x131   :  { %1319 = vmatprep.subr.bf16.mxu1 %v1428_v36 }
 0x134   :  { %1321 = vmatpush3.bf16.msra.mxu1 %v1320_v20 }
 0x135   :  { %1299 = vmatprep.subr.mxu1 %v1426_v27 }
 0x138   :  { %1300 = vmatpush3.msk.msra.mxu1 %vm887_vm3, %v875_v24 }
 0x139   :  { %1302 = vmatmul.mubr.msk.f32.vlgmr.msra.gmra.mrb[10].mxu1 %vm883_vm4, %v782_v25 }
 0x1fe   :  { %v957_v26 = vpop.f32.mrb[8].mxu1 }
 0x1ff   :  { %v1286_v28 = vpop.f32.mrb[9].mxu1 }
 0x20c   :  { %v1033_v29 = vpop.f32.mrb[10].mxu1 }
 0x20d   :  { %v1034_v31 = vadd.f32 %v1033_v29, %v957_v26  ;;  %v1303_v32 = vpop.f32.mrb[11].mxu1 }
 0x20f   :  { %v1044_v27 = vadd.f32 %v1148_v30, %v1034_v31 }
 0x211   :  { %v1046_v33 = vsel %vm1045_vm5, %v1044_v27, -inf }
 0x212   :  { %1047 = vmax.xlane.f32.xlu0 %v1046_v33 }
 0x29f   :  { %v1048_v34 = vpop.xlane.xlu0 %1047 }
 0x2a0   :  { %v1049_v35 = vsub.f32 %v1044_v27, %v1048_v34 }
 0x2a2   :  { %v1050_v36 = vmul.f32 1.442695, %v1049_v35 }
 0x2a4   :  { %1397 = vpow2.f32 %v1050_v36 }
 0x2ae   :  { %v1398_v37 = vpop.eup %1397 }
 0x2af   :  { %v1052_v38 = vsel %vm1045_vm5, %v1398_v37, 0.0 }
 0x2b0   :  { %1053 = vadd.xlane.f32.xlu0 %v1052_v38 }
 0x33d   :  { %v1054_v39 = vpop.xlane.xlu0 %1053 }
 0x33e   :  { %1399 = vlog2.f32 %v1054_v39 }
 0x348   :  { %v1400_v40 = vpop.eup %1399 }
 0x349   :  { %v1056_v41 = vmul.f32 0.6931472, %v1400_v40 }
 0x34b   :  { %v1057_v42 = vsub.f32 %v1049_v35, %v1056_v41 }
 0x34d   :  { %1058 = vst.msk [vmem:[#allocation3] sm:$0x3] %vm1045_vm5, %v1057_v42 }
 0x34e   :  { %1412 = shalt.err (!%p1409_p4)
}
 0x34f   :  { %s1413_s29 = scalar_lea.hbm %s1799_s9, 32 }
 0x350   :  { %p1414_p5 = scmp.ne.s32.totalorder %s1799_s9, %s1413_s29  ;;  %p1417_p6 = scmp.lt.u32.totalorder %s1413_s29, %s1799_s9 }
 0x352   :  { %p1419_p7 = pnand %p1417_p6, %p1414_p5 }
 0x354   :  { %1422 = shalt.err (!%p1419_p7)
}
 0x355   :  { %1068 = dma.vmem_to_hbm [thread:$0]  %s1066_s8, 32, %s1799_s9, [#allocation4]  }
 0x356   :  { %1423 = dma.done.wait [#allocation4], 32  }
 0x357   :  { %1424 = vsyncadd [#allocation4], 4294967264 }
 0x358   :  { %1072 = vsyncpa [#allocation4], 1 }

// kernel: tpu_custom_call.1
= control target key start
LH: loop header
LB: loop body
LE: loop exit
PB: predicated region body
PF: predicated region fallthrough
CT: control target
= control target key end

     0   :  { %v48_v28 = vlaneseq  ;;  %v1425_v36 = vmov 1983009808   ;;  %s1790_s0 = inlined_call_operand.vmem [shape: f32[2,1024], index: 0, kind: input, shape index: {}]   ;;  %s1791_s1 = inlined_call_operand.vmem [shape: f32[2,64], index: 1, kind: input, shape index: {}]   ;;  %s1792_s2 = inlined_call_operand.vmem [shape: bf16[1024,50], index: 2, kind: input, shape index: {}]   ;;  %s1793_s3 = inlined_call_operand.vmem [shape: f32[1,50], index: 3, kind: input, shape index: {}]   ;;  %s1794_s4 = inlined_call_operand.vmem [shape: bf16[64,50], index: 4, kind: input, shape index: {}]   ;;  %s1795_s5 = inlined_call_operand.vmem [shape: f32[1,50], index: 5, kind: input, shape index: {}]   ;;  %s1796_s6 = inlined_call_operand.vmem [shape: f32[50,2], index: 6, kind: input, shape index: {}]   ;;  %s1797_s7 = inlined_call_operand.vmem [shape: f32[50,2], index: 7, kind: input, shape index: {}]   ;;  %s1798_s8 = inlined_call_operand.vmem [shape: f32[1,2], index: 8, kind: input, shape index: {}]   ;;  %s1799_s9 = inlined_call_operand.hbm [shape: f32[2,2], index: 9, kind: output, shape index: {}]  }
   0x1   :  { %v1327_v0 = vld [vmem:[%s1792_s2 + $0x40] sm:$0xff]   ;;  %v1331_v4 = vld [vmem:[%s1792_s2 + $0x48] sm:$0xff]   ;;  %v1335_v8 = vld [vmem:[%s1792_s2 + $0x50] sm:$0xff]   ;;  %v46_v37 = vunpack.c.l.s4 %v1425_v36 }
   0x2   :  { %v1328_v1 = vld [vmem:[%s1792_s2 + $0xc0] sm:$0xff]   ;;  %1149 = vmatprep.subr.bf16.mxu0 %v1327_v0  ;;  %v1332_v5 = vld [vmem:[%s1792_s2 + $0xc8] sm:$0xff]   ;;  %v1336_v9 = vld [vmem:[%s1792_s2 + $0xd0] sm:$0xff]   ;;  %v49_v33 = vshrl.u32 %v48_v28, 7 }
   0x3   :  { %v1329_v2 = vld [vmem:[%s1792_s2] sm:$0xff]   ;;  %1171 = vmatprep.subr.bf16.mxu1 %v1328_v1  ;;  %v1333_v6 = vld [vmem:[%s1792_s2 + $0x8] sm:$0xff]   ;;  %v1337_v10 = vld [vmem:[%s1792_s2 + $0x10] sm:$0xff]   ;;  %v47_v38 = vunpack.c.0.s8 %v46_v37 }
   0x4   :  { %v1330_v3 = vld [vmem:[%s1792_s2 + $0x80] sm:$0xff]   ;;  %1150 = vmatpush3.bf16.msra.mxu0 %v1329_v2  ;;  %v1334_v7 = vld [vmem:[%s1792_s2 + $0x88] sm:$0xff]   ;;  %v1338_v11 = vld [vmem:[%s1792_s2 + $0x90] sm:$0xff]  }
   0x5   :  { %1172 = vmatpush3.bf16.msra.mxu1 %v1330_v3  ;;  %1151 = vmatprep.subr.bf16.mxu0 %v1331_v4  ;;  %v1339_v12 = vld [vmem:[%s1792_s2 + $0x58] sm:$0xff]   ;;  %v1343_v16 = vld [vmem:[%s1792_s2 + $0x60] sm:$0xff]   ;;  %v1347_v20 = vld [vmem:[%s1792_s2 + $0x68] sm:$0xff]   ;;  %v1585_v41 = vsub.s32 %v47_v38, %v49_v33 }
   0x6   :  { %1173 = vmatprep.subr.bf16.mxu1 %v1332_v5  ;;  %v1340_v13 = vld [vmem:[%s1792_s2 + $0xd8] sm:$0xff]   ;;  %v1344_v17 = vld [vmem:[%s1792_s2 + $0xe0] sm:$0xff]   ;;  %v1348_v21 = vld [vmem:[%s1792_s2 + $0xe8] sm:$0xff]  }
   0x7   :  { %v1341_v14 = vld [vmem:[%s1792_s2 + $0x18] sm:$0xff]   ;;  %v1345_v18 = vld [vmem:[%s1792_s2 + $0x20] sm:$0xff]   ;;  %v1349_v22 = vld [vmem:[%s1792_s2 + $0x28] sm:$0xff]  }
   0x8   :  { %1152 = vmatpush3.bf16.msra.mxu0 %v1333_v6  ;;  %v1342_v15 = vld [vmem:[%s1792_s2 + $0x98] sm:$0xff]   ;;  %v1346_v19 = vld [vmem:[%s1792_s2 + $0xa0] sm:$0xff]   ;;  %v1350_v23 = vld [vmem:[%s1792_s2 + $0xa8] sm:$0xff]  }
   0x9   :  { %1174 = vmatpush3.bf16.msra.mxu1 %v1334_v7  ;;  %1153 = vmatprep.subr.bf16.mxu0 %v1335_v8  ;;  %v1351_v24 = vld [vmem:[%s1792_s2 + $0x70] sm:$0xff]   ;;  %v1355_v29 = vld [vmem:[%s1792_s2 + $0x78] sm:$0xff]   ;;  %v40_v34 = vld [vmem:[%s1790_s0] sm:$0xff] }
   0xa   :  { %1175 = vmatprep.subr.bf16.mxu1 %v1336_v9  ;;  %v1352_v25 = vld [vmem:[%s1792_s2 + $0xf0] sm:$0xff]   ;;  %v1356_v30 = vld [vmem:[%s1792_s2 + $0xf8] sm:$0xff]   ;;  %v1360_v35 = vld [vmem:[%s1792_s2 + $0x140] sm:$0xff]   ;;  %v44_v39 = vcombine.high %v40_v34, %v40_v34  ;;  %v51_v42 = vrot.slane %v40_v34, %v1585_v41 }
   0xb   :  { %v1353_v26 = vld [vmem:[%s1792_s2 + $0x30] sm:$0xff]   ;;  %v1357_v31 = vld [vmem:[%s1792_s2 + $0x38] sm:$0xff]   ;;  %v1362_v40 = vld [vmem:[%s1792_s2 + $0x1c0] sm:$0xff]  }
   0xc   :  { %1154 = vmatpush3.bf16.msra.mxu0 %v1337_v10  ;;  %v1354_v27 = vld [vmem:[%s1792_s2 + $0xb0] sm:$0xff]   ;;  %v1358_v32 = vld [vmem:[%s1792_s2 + $0xb8] sm:$0xff]   ;;  %v58_v43 = vrot.slane %v44_v39, %v1585_v41  ;;  %v59_v44 = vcombine.high %v51_v42, %v51_v42  ;;  %v1361_v46 = vld [vmem:[%s1792_s2 + $0x100] sm:$0xff]   ;;  %v86_v47 = vpack.c.bf16 %v51_v42, %v51_v42 }
   0xd   :  { %1176 = vmatpush3.bf16.msra.mxu1 %v1338_v11  ;;  %1155 = vmatprep.subr.bf16.mxu0 %v1339_v12  ;;  %v1363_v49 = vld [vmem:[%s1792_s2 + $0x180] sm:$0xff]   ;;  %v1364_v52 = vld [vmem:[%s1792_s2 + $0x148] sm:$0xff]   ;;  %v1368_v56 = vld [vmem:[%s1792_s2 + $0x150] sm:$0xff]  }
   0xe   :  { %1177 = vmatprep.subr.bf16.mxu1 %v1340_v13  ;;  %v60_v45 = vcombine.high %v58_v43, %v58_v43  ;;  %v88_v48 = vpack.c.bf16 %v58_v43, %v58_v43  ;;  %v87_v50 = vpack.c.bf16 %v59_v44, %v59_v44  ;;  %v1366_v53 = vld [vmem:[%s1792_s2 + $0x1c8] sm:$0xff]   ;;  %v1370_v57 = vld [vmem:[%s1792_s2 + $0x1d0] sm:$0xff]   ;;  %v1372_v60 = vld [vmem:[%s1792_s2 + $0x158] sm:$0xff]  }
   0xf   :  { %v1365_v54 = vld [vmem:[%s1792_s2 + $0x108] sm:$0xff]   ;;  %v1369_v58 = vld [vmem:[%s1792_s2 + $0x110] sm:$0xff]   ;;  %v1374_v61 = vld [vmem:[%s1792_s2 + $0x1d8] sm:$0xff]  }
  0x10   :  { %1156 = vmatpush3.bf16.msra.mxu0 %v1341_v14  ;;  %v89_v51 = vpack.c.bf16 %v60_v45, %v60_v45  ;;  %639 = vmatprep.mubr.bf16.mxu0 %v87_v50  ;;  %v1367_v55 = vld [vmem:[%s1792_s2 + $0x188] sm:$0xff]   ;;  %v1371_v59 = vld [vmem:[%s1792_s2 + $0x190] sm:$0xff]   ;;  %v1373_v62 = vld [vmem:[%s1792_s2 + $0x118] sm:$0xff]  }
  0x11   :  { %1178 = vmatpush3.bf16.msra.mxu1 %v1342_v15  ;;  %1157 = vmatprep.subr.bf16.mxu0 %v1343_v16  ;;  %v1375_v63 = vld [vmem:[%s1792_s2 + $0x198] sm:$0xff]   ;;  %v1376_v0 = vld [vmem:[%s1792_s2 + $0x160] sm:$0xff]   ;;  %v1380_v4 = vld [vmem:[%s1792_s2 + $0x168] sm:$0xff]  }
  0x12   :  { %1179 = vmatprep.subr.bf16.mxu1 %v1344_v17  ;;  %679 = vmatprep.mubr.bf16.mxu1 %v89_v51  ;;  %v1378_v1 = vld [vmem:[%s1792_s2 + $0x1e0] sm:$0xff]   ;;  %v1382_v5 = vld [vmem:[%s1792_s2 + $0x1e8] sm:$0xff]   ;;  %v1384_v8 = vld [vmem:[%s1792_s2 + $0x170] sm:$0xff]  }
  0x13   :  { %v1377_v2 = vld [vmem:[%s1792_s2 + $0x120] sm:$0xff]   ;;  %v1381_v6 = vld [vmem:[%s1792_s2 + $0x128] sm:$0xff]   ;;  %v1386_v10 = vld [vmem:[%s1792_s2 + $0x1f0] sm:$0xff]  }
  0x14   :  { %1158 = vmatpush3.bf16.msra.mxu0 %v1345_v18  ;;  %v1379_v3 = vld [vmem:[%s1792_s2 + $0x1a0] sm:$0xff]   ;;  %v1383_v7 = vld [vmem:[%s1792_s2 + $0x1a8] sm:$0xff]   ;;  %v1385_v13 = vld [vmem:[%s1792_s2 + $0x130] sm:$0xff]  }
  0x15   :  { %1180 = vmatpush3.bf16.msra.mxu1 %v1346_v19  ;;  %1159 = vmatprep.subr.bf16.mxu0 %v1347_v20  ;;  %v41_v9 = vld [vmem:[%s1790_s0 + $0x8] sm:$0xff]  ;;  %v1387_v16 = vld [vmem:[%s1792_s2 + $0x1b0] sm:$0xff]   ;;  %v1388_v17 = vld [vmem:[%s1792_s2 + $0x178] sm:$0xff]  }
  0x16   :  { %1181 = vmatprep.subr.bf16.mxu1 %v1348_v21  ;;  %v68_v11 = vrot.slane %v41_v9, %v1585_v41  ;;  %v61_v12 = vcombine.high %v41_v9, %v41_v9  ;;  %v1390_v18 = vld [vmem:[%s1792_s2 + $0x1f8] sm:$0xff]  }
  0x18   :  { %1160 = vmatpush3.bf16.msra.mxu0 %v1349_v22  ;;  %v76_v14 = vcombine.high %v68_v11, %v68_v11  ;;  %v75_v15 = vrot.slane %v61_v12, %v1585_v41 }
  0x19   :  { %1182 = vmatpush3.bf16.msra.mxu1 %v1350_v23  ;;  %1161 = vmatprep.subr.bf16.mxu0 %v1351_v24 }
  0x1a   :  { %1183 = vmatprep.subr.bf16.mxu1 %v1352_v25  ;;  %v91_v19 = vpack.c.bf16 %v76_v14, %v76_v14  ;;  %v77_v20 = vcombine.high %v75_v15, %v75_v15 }
  0x1c   :  { %1162 = vmatpush3.bf16.msra.mxu0 %v1353_v26 }
  0x1d   :  { %1184 = vmatpush3.bf16.msra.mxu1 %v1354_v27  ;;  %1163 = vmatprep.subr.bf16.mxu0 %v1355_v29 }
  0x1e   :  { %1185 = vmatprep.subr.bf16.mxu1 %v1356_v30 }
  0x20   :  { %1164 = vmatpush3.bf16.msra.mxu0 %v1357_v31 }
  0x21   :  { %1186 = vmatpush3.bf16.msra.mxu1 %v1358_v32  ;;  %1193 = vmatprep.subr.bf16.mxu0 %v1360_v35 }
  0x22   :  { %1215 = vmatprep.subr.bf16.mxu1 %v1362_v40 }
  0x23   :  { %640 = vmatmul.mubr.bf16.vlgmr.msra.gmra.mrb[0].mxu0 %v86_v47 }
  0x24   :  { %680 = vmatmul.mubr.bf16.vlgmr.msra.gmra.mrb[0].mxu1 %v88_v48  ;;  %1194 = vmatpush3.bf16.msra.mxu0 %v1361_v46 }
  0x25   :  { %1216 = vmatpush3.bf16.msra.mxu1 %v1363_v49  ;;  %1195 = vmatprep.subr.bf16.mxu0 %v1364_v52 }
  0x26   :  { %1217 = vmatprep.subr.bf16.mxu1 %v1366_v53 }
  0x28   :  { %1196 = vmatpush3.bf16.msra.mxu0 %v1365_v54 }
  0x29   :  { %1218 = vmatpush3.bf16.msra.mxu1 %v1367_v55  ;;  %1197 = vmatprep.subr.bf16.mxu0 %v1368_v56 }
  0x2a   :  { %1219 = vmatprep.subr.bf16.mxu1 %v1370_v57 }
  0x2c   :  { %1198 = vmatpush3.bf16.msra.mxu0 %v1369_v58 }
  0x2d   :  { %1220 = vmatpush3.bf16.msra.mxu1 %v1371_v59  ;;  %1199 = vmatprep.subr.bf16.mxu0 %v1372_v60 }
  0x2e   :  { %1221 = vmatprep.subr.bf16.mxu1 %v1374_v61 }
  0x30   :  { %1200 = vmatpush3.bf16.msra.mxu0 %v1373_v62 }
  0x31   :  { %1222 = vmatpush3.bf16.msra.mxu1 %v1375_v63  ;;  %1201 = vmatprep.subr.bf16.mxu0 %v1376_v0 }
  0x32   :  { %1223 = vmatprep.subr.bf16.mxu1 %v1378_v1 }
  0x34   :  { %1202 = vmatpush3.bf16.msra.mxu0 %v1377_v2 }
  0x35   :  { %1224 = vmatpush3.bf16.msra.mxu1 %v1379_v3  ;;  %1203 = vmatprep.subr.bf16.mxu0 %v1380_v4 }
  0x36   :  { %1225 = vmatprep.subr.bf16.mxu1 %v1382_v5 }
  0x38   :  { %1204 = vmatpush3.bf16.msra.mxu0 %v1381_v6 }
  0x39   :  { %1226 = vmatpush3.bf16.msra.mxu1 %v1383_v7  ;;  %1205 = vmatprep.subr.bf16.mxu0 %v1384_v8 }
  0x3a   :  { %1227 = vmatprep.subr.bf16.mxu1 %v1386_v10 }
  0x3b   :  { %14 = vsyncpa [#allocation4], 0  ;;  %719 = vmatprep.mubr.bf16.mxu0 %v91_v19  ;;  %v93_v21 = vpack.c.bf16 %v77_v20, %v77_v20  ;;  %v1389_v22 = vld [vmem:[%s1792_s2 + $0x138] sm:$0xff]   ;;  %v90_v24 = vpack.c.bf16 %v68_v11, %v68_v11  ;;  %v92_v25 = vpack.c.bf16 %v75_v15, %v75_v15  ;;  %v1393_v26 = vld [vmem:[%s1794_s4] sm:$0xff]   ;;  %v1426_v27 = vmov 0.0  }
  0x3c   :  { %1206 = vmatpush3.bf16.msra.mxu0 %v1385_v13  ;;  %v1391_v23 = vld [vmem:[%s1792_s2 + $0x1b8] sm:$0xff]   ;;  %v1394_v28 = vld [vmem:[%s1794_s4 + $0x8] sm:$0xff]   ;;  %vm1427_vm0 = vmmov 0   ;;  %v1395_v29 = vld [vmem:[%s1794_s4 + $0x10] sm:$0xff]   ;;  %vm824_vm1 = vcmask 523264   ;;  %vm38_vm2 = vcmask 402432  }
  0x3d   :  { %1228 = vmatpush3.bf16.msra.mxu1 %v1387_v16  ;;  %1207 = vmatprep.subr.bf16.mxu0 %v1388_v17  ;;  %v1396_v30 = vld [vmem:[%s1794_s4 + $0x18] sm:$0xff]   ;;  %v783_v31 = vld [vmem:[%s1791_s1] sm:$0x3]  ;;  %39 = vst.msk [vmem:[#allocation2] sm:$0x3] %vm38_vm2, %v1426_v27  ;;  %v877_v34 = vld [vmem:[%s1797_s7 + $0x8] sm:$0xff] }
  0x3e   :  { %1229 = vmatprep.subr.bf16.mxu1 %v1390_v18  ;;  %759 = vmatprep.mubr.bf16.mxu1 %v93_v21  ;;  %v784_v32 = vpack.c.bf16 %v783_v31, %v783_v31  ;;  %v876_v33 = vld [vmem:[%s1797_s7] sm:$0xff]  ;;  %v1428_v36 = vmov 0.0|0.0   ;;  %v878_v37 = vld [vmem:[%s1797_s7 + $0x10] sm:$0xff]  ;;  %v879_v38 = vld [vmem:[%s1797_s7 + $0x18] sm:$0xff]  ;;  %vm887_vm3 = vcmask 1041408   ;;  %vm883_vm4 = vcmask 408576  }
  0x3f   :  { %v1305_v35 = vpack.c.bf16 %v877_v34, %v876_v33  ;;  %v1308_v39 = vpack.c.bf16 %v879_v38, %v878_v37  ;;  %v880_v40 = vld [vmem:[%s1797_s7 + $0x20] sm:$0xff]  ;;  %v881_v41 = vld [vmem:[%s1797_s7 + $0x28] sm:$0xff]  ;;  %v882_v43 = vld [vmem:[%s1797_s7 + $0x30] sm:$0x3]  ;;  %vm1045_vm5 = vcmask 9216  }
  0x40   :  { %1208 = vmatpush3.bf16.msra.mxu0 %v1389_v22  ;;  %v1311_v42 = vpack.c.bf16 %v881_v41, %v880_v40  ;;  %v1138_v5 = vld [vmem:[%s1795_s5] ss:$0 sm:$0xff]  ;;  %v870_v7 = vld [vmem:[%s1796_s6 + $0x8] sm:$0xff]  ;;  %v871_v15 = vld [vmem:[%s1796_s6 + $0x10] sm:$0xff] }
  0x41   :  { %1230 = vmatpush3.bf16.msra.mxu1 %v1391_v23  ;;  %1258 = vmatprep.subr.bf16.mxu0 %v1426_v27  ;;  %v869_v6 = vld [vmem:[%s1796_s6] sm:$0xff]  ;;  %v872_v16 = vld [vmem:[%s1796_s6 + $0x18] sm:$0xff]  ;;  %v874_v19 = vld [vmem:[%s1796_s6 + $0x28] sm:$0xff] }
  0x42   :  { %1304 = vmatprep.subr.bf16.mxu1 %v1428_v36  ;;  %v1314_v12 = vpack.c.bf16 %v870_v7, %v869_v6  ;;  %v1317_v17 = vpack.c.bf16 %v872_v16, %v871_v15  ;;  %v873_v18 = vld [vmem:[%s1796_s6 + $0x20] sm:$0xff] }
  0x43   :  { %720 = vmatmul.mubr.bf16.vlgmr.msra.gmra.mrb[4].mxu0 %v90_v24  ;;  %v1320_v20 = vpack.c.bf16 %v874_v19, %v873_v18  ;;  %v1137_v22 = vld [vmem:[%s1793_s3] ss:$0 sm:$0xff]  ;;  %v875_v24 = vld [vmem:[%s1796_s6 + $0x30] sm:$0x3]  ;;  %s1429_s6 = smov [#allocation3]  }
  0x44   :  { %760 = vmatmul.mubr.bf16.vlgmr.msra.gmra.mrb[4].mxu1 %v92_v25  ;;  %1259 = vmatpush3.bf16.msra.mxu0 %v1393_v26  ;;  %v94_v2 = vld [vmem:[#allocation2] sm:$0x3] }
  0x45   :  { %1266 = vmatprep.mubr.msk.bf16.mxu0 %vm1427_vm0, %v1426_v27  ;;  %1260 = vmatprep.subr.bf16.mxu0 %v1426_v27 }
  0x46   :  { %1284 = vmatprep.mubr.msk.f32.mxu1 %vm1427_vm0, %v1426_v27  ;;  %1306 = vmatpush3.bf16.msra.mxu1 %v1305_v35 }
  0x47   :  { %1307 = vmatprep.subr.bf16.mxu1 %v1428_v36 }
  0x48   :  { %1261 = vmatpush3.bf16.msra.mxu0 %v1394_v28 }
  0x49   :  { %1262 = vmatprep.subr.bf16.mxu0 %v1426_v27 }
  0x4a   :  { %1309 = vmatpush3.bf16.msra.mxu1 %v1308_v39 }
  0x4b   :  { %1310 = vmatprep.subr.bf16.mxu1 %v1428_v36 }
  0x4c   :  { %1263 = vmatpush3.bf16.msra.mxu0 %v1395_v29 }
  0x4d   :  { %1264 = vmatprep.subr.bf16.mxu0 %v1426_v27 }
  0x4e   :  { %1312 = vmatpush3.bf16.msra.mxu1 %v1311_v42 }
  0x4f   :  { %1282 = vmatprep.subr.mxu1 %v1426_v27 }
  0x50   :  { %1265 = vmatpush3.bf16.msra.mxu0 %v1396_v30  ;;  %v1148_v30 = vld [vmem:[%s1798_s8] ss:$0 sm:$0xff]  ;;  %s1065_s8 = sshll.u32 %s1429_s6, 4  ;;  %s1066_s8 = int_to_ptr.vmem [resolvable:$true] %s1065_s8 }
  0x51   :  { %s1401_s0 = scalar_lea.vmem %s1066_s8, 32  ;;  %p1406_p1 = scmp.lt.s32.totalorder %s1066_s8, %s1066_s8 }
  0x52   :  { %1283 = vmatpush3.msk.msra.mxu1 %vm887_vm3, %v882_v43  ;;  %p1402_p0 = scmp.ne.s32.totalorder %s1066_s8, %s1401_s0  ;;  %p1407_p2 = scmp.lt.s32.totalorder %s1401_s0, %s1401_s0 }
  0x53   :  { %1267 = vmatmul.mubr.msk.bf16.vlgmr.msra.gmra.mrb[8].mxu0 %vm824_vm1, %v784_v32  ;;  %1313 = vmatprep.subr.bf16.mxu1 %v1428_v36 }
  0x54   :  { %p1408_p3 = por %p1407_p2, %p1406_p1 }
  0x56   :  { %p1409_p4 = pnand %p1408_p3, %p1402_p0 }
  0xf6   :  { %v1165_v44 = vpop.f32.mrb[0].mxu0 }
  0xf7   :  { %v1187_v45 = vpop.f32.mrb[0].mxu1  ;;  %v1166_v46 = vpop.f32.mrb[1].mxu0 }
  0xf8   :  { %v1188_v47 = vpop.f32.mrb[1].mxu1  ;;  %v1167_v48 = vadd.f32 %v1166_v46, %v1165_v44  ;;  %v1168_v50 = vpop.f32.mrb[2].mxu0 }
  0xf9   :  { %v1189_v49 = vadd.f32 %v1188_v47, %v1187_v45  ;;  %v1190_v51 = vpop.f32.mrb[2].mxu1  ;;  %v1169_v52 = vpop.f32.mrb[3].mxu0 }
  0xfa   :  { %v1191_v53 = vpop.f32.mrb[3].mxu1 }
  0xfb   :  { %v682_v54 = vadd.f32 %v1189_v49, %v1167_v48 }
 0x116   :  { %v1209_v55 = vpop.f32.mrb[4].mxu0 }
 0x117   :  { %v1231_v56 = vpop.f32.mrb[4].mxu1  ;;  %v1210_v57 = vpop.f32.mrb[5].mxu0 }
 0x118   :  { %v1232_v58 = vpop.f32.mrb[5].mxu1  ;;  %v1211_v59 = vadd.f32 %v1210_v57, %v1209_v55  ;;  %v1212_v60 = vpop.f32.mrb[6].mxu0 }
 0x119   :  { %v1233_v61 = vadd.f32 %v1232_v58, %v1231_v56  ;;  %v1234_v62 = vpop.f32.mrb[6].mxu1  ;;  %v1213_v63 = vpop.f32.mrb[7].mxu0 }
 0x11a   :  { %v1235_v0 = vpop.f32.mrb[7].mxu1  ;;  %v722_v1 = vadd.f32 %v1211_v59, %v682_v54 }
 0x11c   :  { %v762_v3 = vadd.f32 %v1233_v61, %v722_v1 }
 0x11e   :  { %v767_v4 = vadd.f32 %v762_v3, %v94_v2 }
 0x120   :  { %769 = vst.msk [vmem:[#allocation2] sm:$0x3] %vm38_vm2, %v767_v4 }
 0x126   :  { %v862_v8 = vpop.f32.mrb[8].mxu0 }
 0x127   :  { %v863_v9 = vadd.f32 %v1138_v5, %v862_v8  ;;  %v1268_v10 = vpop.f32.mrb[9].mxu0  ;;  %v773_v21 = vld [vmem:[#allocation2] sm:$0x3] }
 0x128   :  { %v865_v11 = vpop.f32.mrb[10].mxu0  ;;  %v781_v23 = vadd.f32 %v1137_v22, %v773_v21 }
 0x129   :  { %v868_v13 = vmax.f32 %v863_v9, 0.0  ;;  %v1269_v14 = vpop.f32.mrb[11].mxu0 }
 0x12a   :  { %v782_v25 = vmax.f32 %v781_v23, 0.0 }
 0x12b   :  { %1285 = vmatmul.mubr.msk.f32.vlgmr.msra.gmra.mrb[8].mxu1 %vm883_vm4, %v868_v13 }
 0x12c   :  { %1315 = vmatpush3.bf16.msra.mxu1 %v1314_v12  ;;  %1301 = vmatprep.mubr.msk.f32.mxu1 %vm1427_vm0, %v1426_v27 }
 0x12d   :  { %1316 = vmatprep.subr.bf16.mxu1 %v1428_v36 }
 0x130   :  { %1318 = vmatpush3.bf16.msra.mxu1 %v1317_v17 }
 0x131   :  { %1319 = vmatprep.subr.bf16.mxu1 %v1428_v36 }
 0x134   :  { %1321 = vmatpush3.bf16.msra.mxu1 %v1320_v20 }
 0x135   :  { %1299 = vmatprep.subr.mxu1 %v1426_v27 }
 0x138   :  { %1300 = vmatpush3.msk.msra.mxu1 %vm887_vm3, %v875_v24 }
 0x139   :  { %1302 = vmatmul.mubr.msk.f32.vlgmr.msra.gmra.mrb[10].mxu1 %vm883_vm4, %v782_v25 }
 0x1fe   :  { %v957_v26 = vpop.f32.mrb[8].mxu1 }
 0x1ff   :  { %v1286_v28 = vpop.f32.mrb[9].mxu1 }
 0x20c   :  { %v1033_v29 = vpop.f32.mrb[10].mxu1 }
 0x20d   :  { %v1034_v31 = vadd.f32 %v1033_v29, %v957_v26  ;;  %v1303_v32 = vpop.f32.mrb[11].mxu1 }
 0x20f   :  { %v1044_v27 = vadd.f32 %v1148_v30, %v1034_v31 }
 0x211   :  { %v1046_v33 = vsel %vm1045_vm5, %v1044_v27, -inf }
 0x212   :  { %1047 = vmax.xlane.f32.xlu0 %v1046_v33 }
 0x29f   :  { %v1048_v34 = vpop.xlane.xlu0 %1047 }
 0x2a0   :  { %v1049_v35 = vsub.f32 %v1044_v27, %v1048_v34 }
 0x2a2   :  { %v1050_v36 = vmul.f32 1.442695, %v1049_v35 }
 0x2a4   :  { %1397 = vpow2.f32 %v1050_v36 }
 0x2ae   :  { %v1398_v37 = vpop.eup %1397 }
 0x2af   :  { %v1052_v38 = vsel %vm1045_vm5, %v1398_v37, 0.0 }
 0x2b0   :  { %1053 = vadd.xlane.f32.xlu0 %v1052_v38 }
 0x33d   :  { %v1054_v39 = vpop.xlane.xlu0 %1053 }
 0x33e   :  { %1399 = vlog2.f32 %v1054_v39 }
 0x348   :  { %v1400_v40 = vpop.eup %1399 }
 0x349   :  { %v1056_v41 = vmul.f32 0.6931472, %v1400_v40 }
 0x34b   :  { %v1057_v42 = vsub.f32 %v1049_v35, %v1056_v41 }
 0x34d   :  { %1058 = vst.msk [vmem:[#allocation3] sm:$0x3] %vm1045_vm5, %v1057_v42 }
 0x34e   :  { %1412 = shalt.err (!%p1409_p4)
}
 0x34f   :  { %s1413_s29 = scalar_lea.hbm %s1799_s9, 32 }
 0x350   :  { %p1414_p5 = scmp.ne.s32.totalorder %s1799_s9, %s1413_s29  ;;  %p1417_p6 = scmp.lt.u32.totalorder %s1413_s29, %s1799_s9 }
 0x352   :  { %p1419_p7 = pnand %p1417_p6, %p1414_p5 }
 0x354   :  { %1422 = shalt.err (!%p1419_p7)
}
 0x355   :  { %1068 = dma.vmem_to_hbm [thread:$0]  %s1066_s8, 32, %s1799_s9, [#allocation4]  }
 0x356   :  { %1423 = dma.done.wait [#allocation4], 32  }
 0x357   :  { %1424 = vsyncadd [#allocation4], 4294967264 }
 0x358   :  { %1072 = vsyncpa [#allocation4], 1 }

</bundles_post_ra>
